<compile_context>
chip_gen: v5e
topology: v5e:2x2
jax: 0.10.0
libtpu: 0.0.40
codegen_flags: <defaults>
</compile_context>

<pallas_src>
import functools

import jax
import jax.numpy as jnp
from jax.experimental import pallas as pl
from jax.experimental.pallas import tpu as pltpu

_LANE = 128


def _round_up(v, m):
    return (v + m - 1) // m * m


def _conv_stats_kernel(x_ref, w_ref, y_ref, stats_ref, acc_ref, *,
                       KH, KW, Ho, Wo, apply_relu):
    """Per-image conv (tap loop, K=Cin_p lane-full matmuls into a VMEM f32
    accumulator) + per-image partial channel sum / sumsq."""
    HW, Cp = acc_ref.shape
    x = x_ref[0]                                     # (Hp, Wp, Cin_p) bf16

    acc_ref[...] = jnp.zeros_like(acc_ref)
    for kh in range(KH):                             # static tap loop (stride=1)
        for kw in range(KW):
            patch = x[kh:kh + Ho, kw:kw + Wo, :]     # (Ho, Wo, Cin_p), lanes full
            patch2d = patch.reshape(HW, patch.shape[-1])
            acc_ref[...] += jnp.dot(patch2d, w_ref[kh, kw],
                                    preferred_element_type=jnp.float32)

    acc = acc_ref[...]                               # (HW, Cout_p) f32

    # Per-image partial stats -> (8, Cout_p) block: row0 = sum, row1 = sumsq.
    s = jnp.sum(acc, axis=0, keepdims=True)
    sq = jnp.sum(acc * acc, axis=0, keepdims=True)
    stats_ref[0] = jnp.concatenate(
        [s, sq, jnp.zeros((6, Cp), jnp.float32)], axis=0)

    out = jnp.maximum(acc, 0.0) if apply_relu else acc   # relu only if BN off
    # TODO(synk): optionally store y in bfloat16 on v5e to halve BN-pass traffic.
    y_ref[0] = out.reshape(Ho, Wo, Cp).astype(y_ref.dtype)


def _bn_apply_kernel(y_ref, scale_ref, shift_ref, o_ref, *, apply_relu):
    """Streaming lane-dense y*scale + shift (+ ReLU). scale/shift precomputed."""
    out = y_ref[...] * scale_ref[0] + shift_ref[0]   # broadcast over (1,Ho,Wo,Cp)
    if apply_relu:
        out = jnp.maximum(out, 0.0)
    o_ref[...] = out.astype(o_ref.dtype)


def conv_bn_relu(x_nchw, weight_oihw, gamma, beta, *, stride=1, padding=0,
                 dilation=1, groups=1, is_relu=True, is_bn=True, eps=1e-5):
    # TODO(synk): stride>1, dilation>1, groups>1 and conv bias not implemented
    # (module defaults are used here).
    assert stride == 1 and dilation == 1 and groups == 1

    N, Cin, H, W = x_nchw.shape
    Cout, Cin_w, KH, KW = weight_oihw.shape
    assert Cin_w == Cin

    Ho = H + 2 * padding - KH + 1
    Wo = W + 2 * padding - KW + 1
    Cin_p = _round_up(Cin, _LANE)
    Cout_p = _round_up(Cout, _LANE)

    # bf16 BEFORE layout transforms so the transpose/pad passes move half the
    # bytes.  NCHW -> NHWC, spatial zero pad, channel zero pad to Cin_p.
    x = jnp.transpose(x_nchw.astype(jnp.bfloat16), (0, 2, 3, 1))
    x = jnp.pad(x, ((0, 0), (padding, padding), (padding, padding),
                    (0, Cin_p - Cin)))
    Hp, Wp = x.shape[1], x.shape[2]

    # OIHW -> (KH, KW, Cin_p, Cout_p), zero padded channels.
    w = jnp.transpose(weight_oihw.astype(jnp.bfloat16), (2, 3, 1, 0))
    w = jnp.pad(w, ((0, 0), (0, 0), (0, Cin_p - Cin), (0, Cout_p - Cout)))

    conv_kernel = functools.partial(
        _conv_stats_kernel, KH=KH, KW=KW, Ho=Ho, Wo=Wo,
        apply_relu=(is_relu and not is_bn))

    # TODO(synk): for feature maps much larger than M2Det's, add row-strip +
    # Cout tiling on extra grid axes to bound the per-step VMEM footprint.
    y, stats = pl.pallas_call(
        conv_kernel,
        out_shape=(jax.ShapeDtypeStruct((N, Ho, Wo, Cout_p), jnp.float32),
                   jax.ShapeDtypeStruct((N, 8, Cout_p), jnp.float32)),
        grid_spec=pltpu.PrefetchScalarGridSpec(
            num_scalar_prefetch=0,
            grid=(N,),
            in_specs=[pl.BlockSpec((1, Hp, Wp, Cin_p), lambda n: (n, 0, 0, 0)),
                      pl.BlockSpec((KH, KW, Cin_p, Cout_p),
                                   lambda n: (0, 0, 0, 0))],
            out_specs=[pl.BlockSpec((1, Ho, Wo, Cout_p), lambda n: (n, 0, 0, 0)),
                       pl.BlockSpec((1, 8, Cout_p), lambda n: (n, 0, 0))],
            scratch_shapes=[pltpu.VMEM((Ho * Wo, Cout_p), jnp.float32)]),
        compiler_params=pltpu.CompilerParams(
            dimension_semantics=("parallel",),     # per-image partial stats
            vmem_limit_bytes=48 * 1024 * 1024),
    )(x, w)

    if is_bn:
        # Tiny per-channel precompute (Cout_p floats): reduce per-image partials
        # and fold BN into a single scale/shift consumed by the streaming kernel.
        count = N * Ho * Wo
        ssum = jnp.sum(stats[:, 0, :], axis=0)
        ssq = jnp.sum(stats[:, 1, :], axis=0)
        mean = ssum / count
        # TODO(synk): use a Welford-style combine at production sizes; the
        # sum/sumsq form can cancel for very large counts/magnitudes.
        var = jnp.maximum(ssq / count - mean * mean, 0.0)  # biased var (BN train)
        gamma_p = jnp.pad(gamma.astype(jnp.float32), (0, Cout_p - Cout))
        beta_p = jnp.pad(beta.astype(jnp.float32), (0, Cout_p - Cout))
        scale = gamma_p * jax.lax.rsqrt(var + eps)
        shift = beta_p - mean * scale

        bn_kernel = functools.partial(_bn_apply_kernel, apply_relu=is_relu)
        y = pl.pallas_call(
            bn_kernel,
            out_shape=jax.ShapeDtypeStruct((N, Ho, Wo, Cout_p), jnp.float32),
            grid_spec=pltpu.PrefetchScalarGridSpec(
                num_scalar_prefetch=0,
                grid=(N,),
                in_specs=[pl.BlockSpec((1, Ho, Wo, Cout_p),
                                       lambda n: (n, 0, 0, 0)),
                          pl.BlockSpec((1, Cout_p), lambda n: (0, 0)),
                          pl.BlockSpec((1, Cout_p), lambda n: (0, 0))],
                out_specs=pl.BlockSpec((1, Ho, Wo, Cout_p),
                                       lambda n: (n, 0, 0, 0))),
            compiler_params=pltpu.CompilerParams(
                dimension_semantics=("parallel",),
                vmem_limit_bytes=48 * 1024 * 1024),
        )(y, scale.reshape(1, Cout_p), shift.reshape(1, Cout_p))

    # TODO(synk): NCHW output could be written directly by the BN kernel to
    # save one HBM round trip (at the cost of lane-dense stores).
    y = y[:, :, :, :Cout]
    return jnp.transpose(y, (0, 3, 1, 2))


def _reference(x_nchw, weight_oihw, gamma, beta, *, padding, eps, is_bn, is_relu):
    y = jax.lax.conv_general_dilated(
        x_nchw, weight_oihw, window_strides=(1, 1),
        padding=[(padding, padding), (padding, padding)],
        dimension_numbers=('NCHW', 'OIHW', 'NCHW'))
    if is_bn:
        mean = jnp.mean(y, axis=(0, 2, 3), keepdims=True)
        var = jnp.mean((y - mean) ** 2, axis=(0, 2, 3), keepdims=True)
        y = ((y - mean) * jax.lax.rsqrt(var + eps)
             * gamma[None, :, None, None] + beta[None, :, None, None])
    if is_relu:
        y = jnp.maximum(y, 0.0)
    return y


if __name__ == "__main__":
    N, Cin, Cout, H, W, K, PAD = 2, 4, 8, 16, 16, 3, 1

    key = jax.random.PRNGKey(0)
    kx, kw, kg, kb = jax.random.split(key, 4)
    x = jax.random.normal(kx, (N, Cin, H, W), jnp.float32)
    weight = jax.random.normal(kw, (Cout, Cin, K, K), jnp.float32) * 0.1
    gamma = jax.random.uniform(kg, (Cout,), jnp.float32, 0.5, 1.5)
    beta = jax.random.uniform(kb, (Cout,), jnp.float32, -0.1, 0.1)

    out = conv_bn_relu(x, weight, gamma, beta, stride=1, padding=PAD,
                       is_relu=True, is_bn=True, eps=1e-5)
    out = jax.block_until_ready(out)

    # Reference with bf16-rounded inputs (same quantization the kernel uses),
    # f32 math everywhere else -> isolates true kernel error.
    xq = x.astype(jnp.bfloat16).astype(jnp.float32)
    wq = weight.astype(jnp.bfloat16).astype(jnp.float32)
    ref = _reference(xq, wq, gamma, beta, padding=PAD, eps=1e-5,
                     is_bn=True, is_relu=True)
    assert out.shape == ref.shape == (N, Cout, H, W)
    err = float(jnp.max(jnp.abs(out - ref)))
    assert jnp.allclose(out, ref, atol=5e-3, rtol=5e-3), err

    print("KERNEL_OK")
</pallas_src>

<mosaic_0001>
module attributes {stable_mosaic.version = 11 : i64} {
  func.func @_conv_stats_kernel(%arg0: i32, %arg1: memref<1x18x18x128xbf16, #tpu.memory_space<vmem>>, %arg2: memref<3x3x128x128xbf16, #tpu.memory_space<vmem>>, %arg3: memref<1x16x16x128xf32, #tpu.memory_space<vmem>>, %arg4: memref<1x8x128xf32, #tpu.memory_space<vmem>>, %arg5: memref<256x128xf32, #tpu.memory_space<vmem>>) attributes {dimension_semantics = [#tpu.dimension_semantics<parallel>], iteration_bounds = array<i64: 2>, scalar_prefetch = 0 : i64, scratch_operands = 1 : i64, tpu.core_type = #tpu.core_type<tc>, window_params = [{transform_indices = @transform_0, window_bounds = array<i64: 1, 18, 18, 128>}, {pipeline_mode = #tpu.pipeline_mode<synchronous>, transform_indices = @transform_1, window_bounds = array<i64: 3, 3, 128, 128>}, {transform_indices = @transform_2, window_bounds = array<i64: 1, 16, 16, 128>}, {transform_indices = @transform_3, window_bounds = array<i64: 1, 8, 128>}]} {
    %c0 = arith.constant 0 : index
    %c0_0 = arith.constant 0 : index
    %c0_1 = arith.constant 0 : index
    %c0_2 = arith.constant 0 : index
    %0 = vector.load %arg1[%c0, %c0_0, %c0_1, %c0_2] : memref<1x18x18x128xbf16, #tpu.memory_space<vmem>>, vector<1x18x18x128xbf16>
    %1 = vector.shape_cast %0 : vector<1x18x18x128xbf16> to vector<18x18x128xbf16>
    %cst = arith.constant 0.000000e+00 : f32
    %2 = vector.broadcast %cst : f32 to vector<256x128xf32>
    %c0_3 = arith.constant 0 : index
    %c0_4 = arith.constant 0 : index
    %3 = vector.load %arg5[%c0_3, %c0_4] : memref<256x128xf32, #tpu.memory_space<vmem>>, vector<256x128xf32>
    tpu.vector_store %arg5[%c0_3, %c0_4], %2 {strides = array<i32>} : memref<256x128xf32, #tpu.memory_space<vmem>>, vector<256x128xf32>,
    %4 = vector.extract_strided_slice %1 {offsets = [0, 0, 0], sizes = [16, 16, 128], strides = [1, 1, 1]} : vector<18x18x128xbf16> to vector<16x16x128xbf16>
    %5 = vector.shape_cast %4 : vector<16x16x128xbf16> to vector<256x128xbf16>
    %c0_5 = arith.constant 0 : index
    %c0_6 = arith.constant 0 : index
    %6 = vector.load %arg5[%c0_5, %c0_6] : memref<256x128xf32, #tpu.memory_space<vmem>>, vector<256x128xf32>
    %c0_7 = arith.constant 0 : index
    %c0_8 = arith.constant 0 : index
    %c0_9 = arith.constant 0 : index
    %c0_10 = arith.constant 0 : index
    %7 = vector.load %arg2[%c0_7, %c0_8, %c0_9, %c0_10] : memref<3x3x128x128xbf16, #tpu.memory_space<vmem>>, vector<1x1x128x128xbf16>
    %8 = vector.shape_cast %7 : vector<1x1x128x128xbf16> to vector<128x128xbf16>
    %cst_11 = arith.constant dense<0.000000e+00> : vector<256x128xf32>
    %9 = tpu.matmul %5, %8, %cst_11 {dimension_numbers = #tpu.dot_dimension_numbers<[1], [0], [0], [1], [0, 0, 1, 1], [], []>} : vector<256x128xbf16>, vector<128x128xbf16>, vector<256x128xf32> -> vector<256x128xf32>
    %10 = arith.addf %6, %9 : vector<256x128xf32>
    %c0_12 = arith.constant 0 : index
    %c0_13 = arith.constant 0 : index
    %11 = vector.load %arg5[%c0_12, %c0_13] : memref<256x128xf32, #tpu.memory_space<vmem>>, vector<256x128xf32>
    tpu.vector_store %arg5[%c0_12, %c0_13], %10 {strides = array<i32>} : memref<256x128xf32, #tpu.memory_space<vmem>>, vector<256x128xf32>,
    %12 = vector.extract_strided_slice %1 {offsets = [0, 1, 0], sizes = [16, 16, 128], strides = [1, 1, 1]} : vector<18x18x128xbf16> to vector<16x16x128xbf16>
    %13 = vector.shape_cast %12 : vector<16x16x128xbf16> to vector<256x128xbf16>
    %c0_14 = arith.constant 0 : index
    %c0_15 = arith.constant 0 : index
    %14 = vector.load %arg5[%c0_14, %c0_15] : memref<256x128xf32, #tpu.memory_space<vmem>>, vector<256x128xf32>
    %c0_16 = arith.constant 0 : index
    %c1 = arith.constant 1 : index
    %c0_17 = arith.constant 0 : index
    %c0_18 = arith.constant 0 : index
    %15 = vector.load %arg2[%c0_16, %c1, %c0_17, %c0_18] : memref<3x3x128x128xbf16, #tpu.memory_space<vmem>>, vector<1x1x128x128xbf16>
    %16 = vector.shape_cast %15 : vector<1x1x128x128xbf16> to vector<128x128xbf16>
    %cst_19 = arith.constant dense<0.000000e+00> : vector<256x128xf32>
    %17 = tpu.matmul %13, %16, %cst_19 {dimension_numbers = #tpu.dot_dimension_numbers<[1], [0], [0], [1], [0, 0, 1, 1], [], []>} : vector<256x128xbf16>, vector<128x128xbf16>, vector<256x128xf32> -> vector<256x128xf32>
    %18 = arith.addf %14, %17 : vector<256x128xf32>
    %c0_20 = arith.constant 0 : index
    %c0_21 = arith.constant 0 : index
    %19 = vector.load %arg5[%c0_20, %c0_21] : memref<256x128xf32, #tpu.memory_space<vmem>>, vector<256x128xf32>
    tpu.vector_store %arg5[%c0_20, %c0_21], %18 {strides = array<i32>} : memref<256x128xf32, #tpu.memory_space<vmem>>, vector<256x128xf32>,
    %20 = vector.extract_strided_slice %1 {offsets = [0, 2, 0], sizes = [16, 16, 128], strides = [1, 1, 1]} : vector<18x18x128xbf16> to vector<16x16x128xbf16>
    %21 = vector.shape_cast %20 : vector<16x16x128xbf16> to vector<256x128xbf16>
    %c0_22 = arith.constant 0 : index
    %c0_23 = arith.constant 0 : index
    %22 = vector.load %arg5[%c0_22, %c0_23] : memref<256x128xf32, #tpu.memory_space<vmem>>, vector<256x128xf32>
    %c0_24 = arith.constant 0 : index
    %c2 = arith.constant 2 : index
    %c0_25 = arith.constant 0 : index
    %c0_26 = arith.constant 0 : index
    %23 = vector.load %arg2[%c0_24, %c2, %c0_25, %c0_26] : memref<3x3x128x128xbf16, #tpu.memory_space<vmem>>, vector<1x1x128x128xbf16>
    %24 = vector.shape_cast %23 : vector<1x1x128x128xbf16> to vector<128x128xbf16>
    %cst_27 = arith.constant dense<0.000000e+00> : vector<256x128xf32>
    %25 = tpu.matmul %21, %24, %cst_27 {dimension_numbers = #tpu.dot_dimension_numbers<[1], [0], [0], [1], [0, 0, 1, 1], [], []>} : vector<256x128xbf16>, vector<128x128xbf16>, vector<256x128xf32> -> vector<256x128xf32>
    %26 = arith.addf %22, %25 : vector<256x128xf32>
    %c0_28 = arith.constant 0 : index
    %c0_29 = arith.constant 0 : index
    %27 = vector.load %arg5[%c0_28, %c0_29] : memref<256x128xf32, #tpu.memory_space<vmem>>, vector<256x128xf32>
    tpu.vector_store %arg5[%c0_28, %c0_29], %26 {strides = array<i32>} : memref<256x128xf32, #tpu.memory_space<vmem>>, vector<256x128xf32>,
    %28 = vector.extract_strided_slice %1 {offsets = [1, 0, 0], sizes = [16, 16, 128], strides = [1, 1, 1]} : vector<18x18x128xbf16> to vector<16x16x128xbf16>
    %29 = vector.shape_cast %28 : vector<16x16x128xbf16> to vector<256x128xbf16>
    %c0_30 = arith.constant 0 : index
    %c0_31 = arith.constant 0 : index
    %30 = vector.load %arg5[%c0_30, %c0_31] : memref<256x128xf32, #tpu.memory_space<vmem>>, vector<256x128xf32>
    %c1_32 = arith.constant 1 : index
    %c0_33 = arith.constant 0 : index
    %c0_34 = arith.constant 0 : index
    %c0_35 = arith.constant 0 : index
    %31 = vector.load %arg2[%c1_32, %c0_33, %c0_34, %c0_35] : memref<3x3x128x128xbf16, #tpu.memory_space<vmem>>, vector<1x1x128x128xbf16>
    %32 = vector.shape_cast %31 : vector<1x1x128x128xbf16> to vector<128x128xbf16>
    %cst_36 = arith.constant dense<0.000000e+00> : vector<256x128xf32>
    %33 = tpu.matmul %29, %32, %cst_36 {dimension_numbers = #tpu.dot_dimension_numbers<[1], [0], [0], [1], [0, 0, 1, 1], [], []>} : vector<256x128xbf16>, vector<128x128xbf16>, vector<256x128xf32> -> vector<256x128xf32>
    %34 = arith.addf %30, %33 : vector<256x128xf32>
    %c0_37 = arith.constant 0 : index
    %c0_38 = arith.constant 0 : index
    %35 = vector.load %arg5[%c0_37, %c0_38] : memref<256x128xf32, #tpu.memory_space<vmem>>, vector<256x128xf32>
    tpu.vector_store %arg5[%c0_37, %c0_38], %34 {strides = array<i32>} : memref<256x128xf32, #tpu.memory_space<vmem>>, vector<256x128xf32>,
    %36 = vector.extract_strided_slice %1 {offsets = [1, 1, 0], sizes = [16, 16, 128], strides = [1, 1, 1]} : vector<18x18x128xbf16> to vector<16x16x128xbf16>
    %37 = vector.shape_cast %36 : vector<16x16x128xbf16> to vector<256x128xbf16>
    %c0_39 = arith.constant 0 : index
    %c0_40 = arith.constant 0 : index
    %38 = vector.load %arg5[%c0_39, %c0_40] : memref<256x128xf32, #tpu.memory_space<vmem>>, vector<256x128xf32>
    %c1_41 = arith.constant 1 : index
    %c1_42 = arith.constant 1 : index
    %c0_43 = arith.constant 0 : index
    %c0_44 = arith.constant 0 : index
    %39 = vector.load %arg2[%c1_41, %c1_42, %c0_43, %c0_44] : memref<3x3x128x128xbf16, #tpu.memory_space<vmem>>, vector<1x1x128x128xbf16>
    %40 = vector.shape_cast %39 : vector<1x1x128x128xbf16> to vector<128x128xbf16>
    %cst_45 = arith.constant dense<0.000000e+00> : vector<256x128xf32>
    %41 = tpu.matmul %37, %40, %cst_45 {dimension_numbers = #tpu.dot_dimension_numbers<[1], [0], [0], [1], [0, 0, 1, 1], [], []>} : vector<256x128xbf16>, vector<128x128xbf16>, vector<256x128xf32> -> vector<256x128xf32>
    %42 = arith.addf %38, %41 : vector<256x128xf32>
    %c0_46 = arith.constant 0 : index
    %c0_47 = arith.constant 0 : index
    %43 = vector.load %arg5[%c0_46, %c0_47] : memref<256x128xf32, #tpu.memory_space<vmem>>, vector<256x128xf32>
    tpu.vector_store %arg5[%c0_46, %c0_47], %42 {strides = array<i32>} : memref<256x128xf32, #tpu.memory_space<vmem>>, vector<256x128xf32>,
    %44 = vector.extract_strided_slice %1 {offsets = [1, 2, 0], sizes = [16, 16, 128], strides = [1, 1, 1]} : vector<18x18x128xbf16> to vector<16x16x128xbf16>
    %45 = vector.shape_cast %44 : vector<16x16x128xbf16> to vector<256x128xbf16>
    %c0_48 = arith.constant 0 : index
    %c0_49 = arith.constant 0 : index
    %46 = vector.load %arg5[%c0_48, %c0_49] : memref<256x128xf32, #tpu.memory_space<vmem>>, vector<256x128xf32>
    %c1_50 = arith.constant 1 : index
    %c2_51 = arith.constant 2 : index
    %c0_52 = arith.constant 0 : index
    %c0_53 = arith.constant 0 : index
    %47 = vector.load %arg2[%c1_50, %c2_51, %c0_52, %c0_53] : memref<3x3x128x128xbf16, #tpu.memory_space<vmem>>, vector<1x1x128x128xbf16>
    %48 = vector.shape_cast %47 : vector<1x1x128x128xbf16> to vector<128x128xbf16>
    %cst_54 = arith.constant dense<0.000000e+00> : vector<256x128xf32>
    %49 = tpu.matmul %45, %48, %cst_54 {dimension_numbers = #tpu.dot_dimension_numbers<[1], [0], [0], [1], [0, 0, 1, 1], [], []>} : vector<256x128xbf16>, vector<128x128xbf16>, vector<256x128xf32> -> vector<256x128xf32>
    %50 = arith.addf %46, %49 : vector<256x128xf32>
    %c0_55 = arith.constant 0 : index
    %c0_56 = arith.constant 0 : index
    %51 = vector.load %arg5[%c0_55, %c0_56] : memref<256x128xf32, #tpu.memory_space<vmem>>, vector<256x128xf32>
    tpu.vector_store %arg5[%c0_55, %c0_56], %50 {strides = array<i32>} : memref<256x128xf32, #tpu.memory_space<vmem>>, vector<256x128xf32>,
    %52 = vector.extract_strided_slice %1 {offsets = [2, 0, 0], sizes = [16, 16, 128], strides = [1, 1, 1]} : vector<18x18x128xbf16> to vector<16x16x128xbf16>
    %53 = vector.shape_cast %52 : vector<16x16x128xbf16> to vector<256x128xbf16>
    %c0_57 = arith.constant 0 : index
    %c0_58 = arith.constant 0 : index
    %54 = vector.load %arg5[%c0_57, %c0_58] : memref<256x128xf32, #tpu.memory_space<vmem>>, vector<256x128xf32>
    %c2_59 = arith.constant 2 : index
    %c0_60 = arith.constant 0 : index
    %c0_61 = arith.constant 0 : index
    %c0_62 = arith.constant 0 : index
    %55 = vector.load %arg2[%c2_59, %c0_60, %c0_61, %c0_62] : memref<3x3x128x128xbf16, #tpu.memory_space<vmem>>, vector<1x1x128x128xbf16>
    %56 = vector.shape_cast %55 : vector<1x1x128x128xbf16> to vector<128x128xbf16>
    %cst_63 = arith.constant dense<0.000000e+00> : vector<256x128xf32>
    %57 = tpu.matmul %53, %56, %cst_63 {dimension_numbers = #tpu.dot_dimension_numbers<[1], [0], [0], [1], [0, 0, 1, 1], [], []>} : vector<256x128xbf16>, vector<128x128xbf16>, vector<256x128xf32> -> vector<256x128xf32>
    %58 = arith.addf %54, %57 : vector<256x128xf32>
    %c0_64 = arith.constant 0 : index
    %c0_65 = arith.constant 0 : index
    %59 = vector.load %arg5[%c0_64, %c0_65] : memref<256x128xf32, #tpu.memory_space<vmem>>, vector<256x128xf32>
    tpu.vector_store %arg5[%c0_64, %c0_65], %58 {strides = array<i32>} : memref<256x128xf32, #tpu.memory_space<vmem>>, vector<256x128xf32>,
    %60 = vector.extract_strided_slice %1 {offsets = [2, 1, 0], sizes = [16, 16, 128], strides = [1, 1, 1]} : vector<18x18x128xbf16> to vector<16x16x128xbf16>
    %61 = vector.shape_cast %60 : vector<16x16x128xbf16> to vector<256x128xbf16>
    %c0_66 = arith.constant 0 : index
    %c0_67 = arith.constant 0 : index
    %62 = vector.load %arg5[%c0_66, %c0_67] : memref<256x128xf32, #tpu.memory_space<vmem>>, vector<256x128xf32>
    %c2_68 = arith.constant 2 : index
    %c1_69 = arith.constant 1 : index
    %c0_70 = arith.constant 0 : index
    %c0_71 = arith.constant 0 : index
    %63 = vector.load %arg2[%c2_68, %c1_69, %c0_70, %c0_71] : memref<3x3x128x128xbf16, #tpu.memory_space<vmem>>, vector<1x1x128x128xbf16>
    %64 = vector.shape_cast %63 : vector<1x1x128x128xbf16> to vector<128x128xbf16>
    %cst_72 = arith.constant dense<0.000000e+00> : vector<256x128xf32>
    %65 = tpu.matmul %61, %64, %cst_72 {dimension_numbers = #tpu.dot_dimension_numbers<[1], [0], [0], [1], [0, 0, 1, 1], [], []>} : vector<256x128xbf16>, vector<128x128xbf16>, vector<256x128xf32> -> vector<256x128xf32>
    %66 = arith.addf %62, %65 : vector<256x128xf32>
    %c0_73 = arith.constant 0 : index
    %c0_74 = arith.constant 0 : index
    %67 = vector.load %arg5[%c0_73, %c0_74] : memref<256x128xf32, #tpu.memory_space<vmem>>, vector<256x128xf32>
    tpu.vector_store %arg5[%c0_73, %c0_74], %66 {strides = array<i32>} : memref<256x128xf32, #tpu.memory_space<vmem>>, vector<256x128xf32>,
    %68 = vector.extract_strided_slice %1 {offsets = [2, 2, 0], sizes = [16, 16, 128], strides = [1, 1, 1]} : vector<18x18x128xbf16> to vector<16x16x128xbf16>
    %69 = vector.shape_cast %68 : vector<16x16x128xbf16> to vector<256x128xbf16>
    %c0_75 = arith.constant 0 : index
    %c0_76 = arith.constant 0 : index
    %70 = vector.load %arg5[%c0_75, %c0_76] : memref<256x128xf32, #tpu.memory_space<vmem>>, vector<256x128xf32>
    %c2_77 = arith.constant 2 : index
    %c2_78 = arith.constant 2 : index
    %c0_79 = arith.constant 0 : index
    %c0_80 = arith.constant 0 : index
    %71 = vector.load %arg2[%c2_77, %c2_78, %c0_79, %c0_80] : memref<3x3x128x128xbf16, #tpu.memory_space<vmem>>, vector<1x1x128x128xbf16>
    %72 = vector.shape_cast %71 : vector<1x1x128x128xbf16> to vector<128x128xbf16>
    %cst_81 = arith.constant dense<0.000000e+00> : vector<256x128xf32>
    %73 = tpu.matmul %69, %72, %cst_81 {dimension_numbers = #tpu.dot_dimension_numbers<[1], [0], [0], [1], [0, 0, 1, 1], [], []>} : vector<256x128xbf16>, vector<128x128xbf16>, vector<256x128xf32> -> vector<256x128xf32>
    %74 = arith.addf %70, %73 : vector<256x128xf32>
    %c0_82 = arith.constant 0 : index
    %c0_83 = arith.constant 0 : index
    %75 = vector.load %arg5[%c0_82, %c0_83] : memref<256x128xf32, #tpu.memory_space<vmem>>, vector<256x128xf32>
    tpu.vector_store %arg5[%c0_82, %c0_83], %74 {strides = array<i32>} : memref<256x128xf32, #tpu.memory_space<vmem>>, vector<256x128xf32>,
    %c0_84 = arith.constant 0 : index
    %c0_85 = arith.constant 0 : index
    %76 = vector.load %arg5[%c0_84, %c0_85] : memref<256x128xf32, #tpu.memory_space<vmem>>, vector<256x128xf32>
    %cst_86 = arith.constant dense<0.000000e+00> : vector<128xf32>
    %77 = vector.multi_reduction <add>, %76, %cst_86 [0] : vector<256x128xf32> to vector<128xf32>
    %78 = vector.shape_cast %77 : vector<128xf32> to vector<1x128xf32>
    %79 = arith.mulf %76, %76 : vector<256x128xf32>
    %cst_87 = arith.constant dense<0.000000e+00> : vector<128xf32>
    %80 = vector.multi_reduction <add>, %79, %cst_87 [0] : vector<256x128xf32> to vector<128xf32>
    %81 = vector.shape_cast %80 : vector<128xf32> to vector<1x128xf32>
    %cst_88 = arith.constant 0.000000e+00 : f32
    %82 = vector.broadcast %cst_88 : f32 to vector<6x128xf32>
    %83 = tpu.concatenate %78, %81, %82 in 0 : vector<1x128xf32>, vector<1x128xf32>, vector<6x128xf32> -> vector<8x128xf32>
    %c0_89 = arith.constant 0 : index
    %c0_90 = arith.constant 0 : index
    %c0_91 = arith.constant 0 : index
    %84 = vector.load %arg4[%c0_89, %c0_90, %c0_91] : memref<1x8x128xf32, #tpu.memory_space<vmem>>, vector<1x8x128xf32>
    %85 = vector.shape_cast %84 : vector<1x8x128xf32> to vector<8x128xf32>
    %86 = vector.shape_cast %83 : vector<8x128xf32> to vector<1x8x128xf32>
    tpu.vector_store %arg4[%c0_89, %c0_90, %c0_91], %86 {strides = array<i32>} : memref<1x8x128xf32, #tpu.memory_space<vmem>>, vector<1x8x128xf32>,
    %87 = vector.shape_cast %76 : vector<256x128xf32> to vector<16x16x128xf32>
    %c0_92 = arith.constant 0 : index
    %c0_93 = arith.constant 0 : index
    %c0_94 = arith.constant 0 : index
    %c0_95 = arith.constant 0 : index
    %88 = vector.load %arg3[%c0_92, %c0_93, %c0_94, %c0_95] : memref<1x16x16x128xf32, #tpu.memory_space<vmem>>, vector<1x16x16x128xf32>
    %89 = vector.shape_cast %88 : vector<1x16x16x128xf32> to vector<16x16x128xf32>
    %90 = vector.shape_cast %87 : vector<16x16x128xf32> to vector<1x16x16x128xf32>
    tpu.vector_store %arg3[%c0_92, %c0_93, %c0_94, %c0_95], %90 {strides = array<i32>} : memref<1x16x16x128xf32, #tpu.memory_space<vmem>>, vector<1x16x16x128xf32>,
    return
  }
  func.func @transform_0(%arg0: i32) -> (i32, i32, i32, i32) {
    %c0_i32 = arith.constant 0 : i32
    %c0_i32_0 = arith.constant 0 : i32
    %c0_i32_1 = arith.constant 0 : i32
    %c0_i32_2 = arith.constant 0 : i32
    return %arg0, %c0_i32, %c0_i32_0, %c0_i32_1 : i32, i32, i32, i32
  }
  func.func @transform_1(%arg0: i32) -> (i32, i32, i32, i32) {
    %c0_i32 = arith.constant 0 : i32
    %c0_i32_0 = arith.constant 0 : i32
    %c0_i32_1 = arith.constant 0 : i32
    %c0_i32_2 = arith.constant 0 : i32
    %c0_i32_3 = arith.constant 0 : i32
    return %c0_i32, %c0_i32_0, %c0_i32_1, %c0_i32_2 : i32, i32, i32, i32
  }
  func.func @transform_2(%arg0: i32) -> (i32, i32, i32, i32) {
    %c0_i32 = arith.constant 0 : i32
    %c0_i32_0 = arith.constant 0 : i32
    %c0_i32_1 = arith.constant 0 : i32
    %c0_i32_2 = arith.constant 0 : i32
    return %arg0, %c0_i32, %c0_i32_0, %c0_i32_1 : i32, i32, i32, i32
  }
  func.func @transform_3(%arg0: i32) -> (i32, i32, i32) {
    %c0_i32 = arith.constant 0 : i32
    %c0_i32_0 = arith.constant 0 : i32
    %c0_i32_1 = arith.constant 0 : i32
    return %arg0, %c0_i32, %c0_i32_0 : i32, i32, i32
  }
}

</mosaic_0001>

<bundles_post_ra>
// kernel: tpu_custom_call.1
= control target key start
LH: loop header
LB: loop body
LE: loop exit
PB: predicated region body
PF: predicated region fallthrough
CT: control target
= control target key end

     0   :  { %9 = vsyncpa [#allocation4], 0  ;;  %s5708_s0 = inlined_call_operand.vmem [shape: bf16[2,18,18,128], index: 0, kind: input, shape index: {}]   ;;  %s5709_s1 = inlined_call_operand.vmem [shape: bf16[3,3,128,128], index: 1, kind: input, shape index: {}]   ;;  %s5710_s2 = inlined_call_operand.hbm [shape: f32[2,16,16,128], index: 2, kind: output, shape index: {0}]   ;;  %s5711_s3 = inlined_call_operand.hbm [shape: f32[2,8,128], index: 3, kind: output, shape index: {1}]  }
   0x1   :  { %11 = vsyncpa [#allocation4 + $0x1], 0 }
   0x2   :  { %12 = vsyncpa [#allocation6], 0 }
   0x3   :  { %14 = vsyncpa [#allocation6 + $0x1], 0  ;;  %s4468_s12 = smov 0   ;;  %s4470_s13 = smov 0  }
   0x4   :  { %s4472_s14 = smov 0   ;;  %s4474_s15 = smov 0  }
   0x5 LB: > { %s4489_s16 = sadd.s32 4294967295, %s4444_s15   ;;  %s3654_s17 = sadd.s32 4294967294, %s4444_s15   ;;  %s4444_s15 = sphi %s4474_s15, %s5803_s15   ;;  %s4440_s14 = sphi %s4472_s14, %s5802_s14   ;;  %s4436_s13 = sphi %s4470_s13, %s5801_s13   ;;  %s4432_s12 = sphi %s4468_s12, %s5800_s12  }
   0x6   : > { %s4493_s18 = sadd.s32 1, %s4444_s15   ;;  %s74_s19 = sadd.s32 1, %s4440_s14 }
   0x7   : > { %s71_s20 = ssub.s32 %s4444_s15, %s4493_s18  ;;  %p84_p0 = scmp.ne.s32.totalorder %s4440_s14, %s4436_s13 }
   0x8   : > { %p72_p1 = scmp.eq.s32.totalorder %s71_s20, 0  ;;  %p85_p2 = scmp.eq.s32.totalorder %s4489_s16, 1 }
   0x9   : > { %p90_p3 = scmp.ne.s32.totalorder %s4436_s13, %s4432_s12  ;;  %p91_p4 = scmp.eq.s32.totalorder %s3654_s17, 1 }
   0xa   : > { %s4504_s21 = scalar_select %p72_p1, %s4440_s14, %s74_s19  }
   0xb   : > { %p4506_p5 = por %p85_p2, %p84_p0  ;;  %p4510_p6 = por %p91_p4, %p90_p3 }
   0xc   : > { %p3657_p7 = scmp.ge.s32.totalorder %s4444_s15, 1  ;;  %p146_p8 = scmp.lt.s32.totalorder %s4444_s15, 3 }
   0xe   : > { %p147_p9 = pnand %p3657_p7, %p146_p8 }
  0x10   : > { %150 = sbr.rel (%p147_p9) target bundleno = 780 (0x30c), region = 28 }
  0x15   : > { %v4199_v0 = vld [vmem:[%s5709_s1 + $0x38] sm:$0xff]  ;;  %v4198_v1 = vld [vmem:[%s5709_s1 + $0x30] sm:$0xff]  ;;  %v4197_v2 = vld [vmem:[%s5709_s1 + $0x28] sm:$0xff]  ;;  %p175_p10 = scmp.lt.s32.totalorder %s4489_s16, 1  ;;  %vm611_vm0 = vsmask.f32 3328 }
  0x16   : > { %4265 = vmatpush.bf16.msra.mxu1 %v4199_v0  ;;  %4266 = vmatpush.bf16.msra.mxu2 %v4199_v0  ;;  %v4196_v3 = vld [vmem:[%s5709_s1 + $0x20] sm:$0xff]  ;;  %v4195_v4 = vld [vmem:[%s5709_s1 + $0x18] sm:$0xff]  ;;  %v4194_v5 = vld [vmem:[%s5709_s1 + $0x10] sm:$0xff]  ;;  %vm612_vm1 = vsmask.f32 7440  ;;  %vm1328_vm2 = vcmask 1042432  }
  0x17   : > { %4267 = vmatpush.bf16.msra.mxu3 %v4199_v0  ;;  %458 = vmatpush.bf16.msra.mxu0 %v4199_v0  ;;  %s176_s9 = scalar_select %p175_p10, %s4489_s16, 1  ;;  %v4193_v6 = vld [vmem:[%s5709_s1 + $0x8] sm:$0xff]  ;;  %v4192_v7 = vld [vmem:[%s5709_s1] sm:$0xff]  ;;  %v4215_v8 = vld [vmem:[%s5709_s1 + $0xb8] sm:$0xff]  ;;  %vm1329_vm3 = vcmask 1046532  }
  0x18   : > { %v4223_v9 = vld [vmem:[%s5709_s1 + $0xf8] sm:$0xff]  ;;  %v4214_v16 = vld [vmem:[%s5709_s1 + $0xb0] sm:$0xff]  ;;  %v4213_v20 = vld [vmem:[%s5709_s1 + $0xa8] sm:$0xff]  ;;  %s4370_s5 = scalar_lea.hbm %s5710_s2, 512 }
  0x19   : > { %s4289_s17 = smul.u32 216, %s176_s9  ;;  %v4207_v14 = vld [vmem:[%s5709_s1 + $0x78] sm:$0xff]  ;;  %v4222_v17 = vld [vmem:[%s5709_s1 + $0xf0] sm:$0xff]  ;;  %v4221_v21 = vld [vmem:[%s5709_s1 + $0xe8] sm:$0xff]  ;;  %s5538_s9 = sand.u32 1, %s4436_s13  }
  0x1a   : > { %4268 = vmatpush.bf16.msra.mxu1 %v4198_v1  ;;  %4269 = vmatpush.bf16.msra.mxu2 %v4198_v1  ;;  %v4231_v15 = vld [vmem:[%s5709_s1 + $0x138] sm:$0xff]  ;;  %v4206_v18 = vld [vmem:[%s5709_s1 + $0x70] sm:$0xff]  ;;  %v4205_v22 = vld [vmem:[%s5709_s1 + $0x68] sm:$0xff]  ;;  %s3658_s10 = sshll.u32 %s5538_s9, 8  ;;  %s3525_s27 = scalar_lea.sflag [#allocation4], %s5538_s9 }
  0x1b   : > { %4270 = vmatpush.bf16.msra.mxu3 %v4198_v1  ;;  %459 = vmatpush.bf16.msra.mxu0 %v4198_v1  ;;  %s4545_s26 = scalar_lea.vmem %s5708_s0, %s4289_s17  ;;  %v4230_v19 = vld [vmem:[%s5709_s1 + $0x130] sm:$0xff]  ;;  %v4229_v23 = vld [vmem:[%s5709_s1 + $0x128] sm:$0xff]  ;;  %v4212_v24 = vld [vmem:[%s5709_s1 + $0xa0] sm:$0xff]  ;;  %s5542_s11 = scalar_lea.vmem [#allocation3], %s3658_s10 }
  0x1c   : > { %v4554_v10 = vld [vmem:[%s4545_s26 + $0x30] sm:$0xff]  ;;  %v4557_v11 = vld [vmem:[%s4545_s26 + $0x60] sm:$0xff]  ;;  %v4211_v28 = vld [vmem:[%s5709_s1 + $0x98] sm:$0xff]  ;;  %s3542_s24 = sshll.u32 %s5542_s11, 4  ;;  %s3543_s24 = int_to_ptr.vmem [resolvable:$true] %s3542_s24 }
  0x1d   : > { %v4186_v12 = vld [vmem:[%s4545_s26 + $0x90] sm:$0xff]  ;;  %v4174_v13 = vld [vmem:[%s4545_s26] sm:$0xff]  ;;  %v4219_v29 = vld [vmem:[%s5709_s1 + $0xd8] sm:$0xff] }
  0x1e   : > { %4271 = vmatpush.bf16.msra.mxu1 %v4197_v2  ;;  %4272 = vmatpush.bf16.msra.mxu2 %v4197_v2  ;;  %v4220_v25 = vld [vmem:[%s5709_s1 + $0xe0] sm:$0xff]  ;;  %v4615_v31 = vld [vmem:[%s4545_s26 + $0x6c] sm:$0xff]  ;;  %v4203_v34 = vld [vmem:[%s5709_s1 + $0x58] sm:$0xff] }
  0x1f   : > { %4273 = vmatpush.bf16.msra.mxu3 %v4197_v2  ;;  %460 = vmatpush.bf16.msra.mxu0 %v4197_v2  ;;  %v4204_v26 = vld [vmem:[%s5709_s1 + $0x60] sm:$0xff]  ;;  %v4619_v33 = vld [vmem:[%s4545_s26 + $0xc] sm:$0xff]  ;;  %v4227_v35 = vld [vmem:[%s5709_s1 + $0x118] sm:$0xff] }
  0x20   : > { %v4228_v27 = vld [vmem:[%s5709_s1 + $0x120] sm:$0xff]  ;;  %v4210_v36 = vld [vmem:[%s5709_s1 + $0x90] sm:$0xff]  ;;  %v4209_v40 = vld [vmem:[%s5709_s1 + $0x88] sm:$0xff] }
  0x21   : > { %v4612_v30 = vld [vmem:[%s4545_s26 + $0x3c] sm:$0xff]  ;;  %v4218_v37 = vld [vmem:[%s5709_s1 + $0xd0] sm:$0xff]  ;;  %v4217_v41 = vld [vmem:[%s5709_s1 + $0xc8] sm:$0xff] }
  0x22   : > { %4274 = vmatpush.bf16.msra.mxu1 %v4196_v3  ;;  %4275 = vmatpush.bf16.msra.mxu2 %v4196_v3  ;;  %v4187_v32 = vld [vmem:[%s4545_s26 + $0x9c] sm:$0xff]  ;;  %v4202_v38 = vld [vmem:[%s5709_s1 + $0x50] sm:$0xff]  ;;  %v4201_v42 = vld [vmem:[%s5709_s1 + $0x48] sm:$0xff] }
  0x23   : > { %4276 = vmatpush.bf16.msra.mxu3 %v4196_v3  ;;  %461 = vmatpush.bf16.msra.mxu0 %v4196_v3  ;;  %v4226_v39 = vld [vmem:[%s5709_s1 + $0x110] sm:$0xff]  ;;  %v4225_v43 = vld [vmem:[%s5709_s1 + $0x108] sm:$0xff]  ;;  %v4208_v44 = vld [vmem:[%s5709_s1 + $0x80] sm:$0xff] }
  0x24   : > { %v4216_v45 = vld [vmem:[%s5709_s1 + $0xc0] sm:$0xff]  ;;  %v4667_v48 = vld [vmem:[%s4545_s26 + $0x48] sm:$0xff]  ;;  %v4184_v49 = vld [vmem:[%s4545_s26 + $0x78] sm:$0xff] }
  0x25   : > { %v4200_v46 = vld [vmem:[%s5709_s1 + $0x40] sm:$0xff]  ;;  %v4188_v50 = vld [vmem:[%s4545_s26 + $0xa8] sm:$0xff]  ;;  %v4672_v51 = vld [vmem:[%s4545_s26 + $0x18] sm:$0xff] }
  0x26   : > { %4277 = vmatpush.bf16.msra.mxu1 %v4195_v4  ;;  %4278 = vmatpush.bf16.msra.mxu2 %v4195_v4  ;;  %v4224_v47 = vld [vmem:[%s5709_s1 + $0x100] sm:$0xff]  ;;  %v4247_v54 = vld [vmem:[%s5709_s1 + $0x1b8] sm:$0xff]  ;;  %v4699_v62 = vld [vmem:[%s4545_s26 + $0xc] sm:$0xf] }
  0x27   : > { %4279 = vmatpush.bf16.msra.mxu3 %v4195_v4  ;;  %462 = vmatpush.bf16.msra.mxu0 %v4195_v4  ;;  %v4675_v52 = vld [vmem:[%s4545_s26] sm:$0xf]  ;;  %v4679_v53 = vld [vmem:[%s4545_s26 + $0x4] sm:$0xf]  ;;  %v4255_v55 = vld [vmem:[%s5709_s1 + $0x1f8] sm:$0xff]  ;;  %v639_v1 = vshrl.u32 %v4699_v62, 16 }
  0x28   : > { %v4239_v56 = vld [vmem:[%s5709_s1 + $0x178] sm:$0xff]  ;;  %v615_v57 = vshrl.u32 %v4675_v52, 16  ;;  %v618_v58 = vshll.u32 %v4675_v52, 16  ;;  %v624_v60 = vshll.u32 %v4679_v53, 16  ;;  %v628_v61 = vshrl.u32 %v4679_v53, 16  ;;  %vm4723_vm4 = vmor %vm611_vm0, %vm612_vm1 }
  0x29   : > { %v4263_v59 = vld [vmem:[%s5709_s1 + $0x238] sm:$0xff]  ;;  %v4702_v63 = vld [vmem:[%s4545_s26 + $0x10] sm:$0xf]  ;;  %v182_v0 = vld [vmem:[%s4545_s26 + $0x8] sm:$0x1]  ;;  %v642_v2 = vshll.u32 %v4699_v62, 16 }
  0x2a   : > { %4280 = vmatpush.bf16.msra.mxu1 %v4194_v5  ;;  %4281 = vmatpush.bf16.msra.mxu2 %v4194_v5  ;;  %v648_v3 = vshll.u32 %v4702_v63, 16  ;;  %v652_v4 = vshrl.u32 %v4702_v63, 16  ;;  %vm4728_vm5 = vmor %vm1328_vm2, %vm1329_vm3 }
  0x2b   : > { %4282 = vmatpush.bf16.msra.mxu3 %v4194_v5  ;;  %463 = vmatpush.bf16.msra.mxu0 %v4194_v5  ;;  %v617_v5 = vrot.slane %v615_v57, 4 }
  0x2e   : > { %4283 = vmatpush.bf16.msra.mxu1 %v4193_v6  ;;  %4284 = vmatpush.bf16.msra.mxu2 %v4193_v6 }
  0x2f   : > { %4285 = vmatpush.bf16.msra.mxu3 %v4193_v6  ;;  %464 = vmatpush.bf16.msra.mxu0 %v4193_v6  ;;  %v620_v6 = vrot.slane %v618_v58, 5 }
  0x32   : > { %4286 = vmatpush.bf16.msra.mxu1 %v4192_v7  ;;  %4287 = vmatpush.bf16.msra.mxu2 %v4192_v7 }
  0x33   : > { %4288 = vmatpush.bf16.msra.mxu3 %v4192_v7  ;;  %465 = vmatpush.bf16.msra.mxu0 %v4192_v7  ;;  %v626_v7 = vrot.slane %v624_v60, 5 }
  0x35   : > { %486 = vmatmul.bf16.vlgmr.msra.gmra.mxu1 %v4554_v10  ;;  %506 = vmatmul.bf16.vlgmr.msra.gmra.mxu2 %v4557_v11 }
  0x36   : > { %1604 = vmatpush.bf16.msrb.mxu2 %v4215_v8  ;;  %526 = vmatmul.bf16.vlgmr.msra.gmra.mxu3 %v4186_v12  ;;  %v630_v8 = vrot.slane %v628_v61, 4  ;;  %v641_v12 = vrot.slane %v639_v1, 4 }
  0x37   : > { %1860 = vmatpush.bf16.msrb.mxu3 %v4223_v9  ;;  %466 = vmatmul.bf16.vlgmr.msra.gmra.mxu0 %v4174_v13  ;;  %v634_v9 = vshll.u32 %v182_v0, 16  ;;  %v644_v13 = vrot.slane %v642_v2, 5 }
  0x38   : > { %1159 = vmatpush.bf16.msrb.mxu1 %v4207_v14  ;;  %2138 = vmatpush.bf16.msrb.mxu0 %v4231_v15  ;;  %v650_v14 = vrot.slane %v648_v3, 5  ;;  %v654_v15 = vrot.slane %v652_v4, 4  ;;  %v4756_v3 = vld [vmem:[%s4545_s26 + $0x20] sm:$0x1] }
  0x3a   : > { %1605 = vmatpush.bf16.msrb.mxu2 %v4214_v16  ;;  %v621_v16 = vor.u32 %v620_v6, %v617_v5  ;;  %v1340_v5 = vrot.slane %v4702_v63, 5  ;;  %v4246_v63 = vld [vmem:[%s5709_s1 + $0x1b0] sm:$0xff] }
  0x3b   : > { %1861 = vmatpush.bf16.msrb.mxu3 %v4222_v17  ;;  %v631_v17 = vor.u32 %v630_v8, %v626_v7 }
  0x3c   : > { %1160 = vmatpush.bf16.msrb.mxu1 %v4206_v18  ;;  %2139 = vmatpush.bf16.msrb.mxu0 %v4230_v19  ;;  %v1333_v18 = vrot.slane %v4679_v53, 5  ;;  %v4711_v19 = vld [vmem:[%s4545_s26 + $0x14] sm:$0x1] }
  0x3e   : > { %1606 = vmatpush.bf16.msrb.mxu2 %v4213_v20  ;;  %v4714_v20 = vld [vmem:[%s4545_s26 + $0x54] sm:$0xff] }
  0x3f   : > { %1862 = vmatpush.bf16.msrb.mxu3 %v4221_v21  ;;  %v4185_v21 = vld [vmem:[%s4545_s26 + $0x84] sm:$0xff] }
  0x40   : > { %1161 = vmatpush.bf16.msrb.mxu1 %v4205_v22  ;;  %2140 = vmatpush.bf16.msrb.mxu0 %v4229_v23  ;;  %v4189_v22 = vld [vmem:[%s4545_s26 + $0xb4] sm:$0xff]  ;;  %v4719_v23 = vld [vmem:[%s4545_s26 + $0x24] sm:$0xff] }
  0x42   : > { %1607 = vmatpush.bf16.msrb.mxu2 %v4212_v24  ;;  %v636_v24 = vrot.slane %v634_v9, 5  ;;  %v682_v9 = vshll.u32 %v4756_v3, 16 }
  0x43   : > { %1863 = vmatpush.bf16.msrb.mxu3 %v4220_v25  ;;  %v3805_v25 = vrot.slane %v4675_v52, 9 }
  0x44   : > { %1162 = vmatpush.bf16.msrb.mxu1 %v4204_v26  ;;  %2141 = vmatpush.bf16.msrb.mxu0 %v4228_v27  ;;  %v645_v26 = vor.u32 %v644_v13, %v641_v12  ;;  %v655_v27 = vor.u32 %v654_v15, %v650_v14  ;;  %v3806_v13 = vrot.slane %v4699_v62, 9  ;;  %v1343_v15 = vrot.slane %v4711_v19, 5  ;;  %v4238_v62 = vld [vmem:[%s5709_s1 + $0x170] sm:$0xff] }
  0x45   : > { %491 = vmatmul.bf16.gmra.mxu1 %v4612_v30  ;;  %511 = vmatmul.bf16.gmra.mxu2 %v4615_v31 }
  0x46   : > { %1608 = vmatpush.bf16.msrb.mxu2 %v4211_v28  ;;  %531 = vmatmul.bf16.gmra.mxu3 %v4187_v32  ;;  %v658_v28 = vshll.u32 %v4711_v19, 16  ;;  %v622_v32 = vrot.slane %v621_v16, 4  ;;  %v4776_v19 = vld [vmem:[%s4545_s26 + $0x28] sm:$0xf] }
  0x47   : > { %1864 = vmatpush.bf16.msrb.mxu3 %v4219_v29  ;;  %471 = vmatmul.bf16.gmra.mxu0 %v4619_v33 }
  0x48   : > { %1163 = vmatpush.bf16.msrb.mxu1 %v4203_v34  ;;  %2142 = vmatpush.bf16.msrb.mxu0 %v4227_v35  ;;  %v632_v34 = vrot.slane %v631_v17, 4  ;;  %v1335_v35 = vrot.slane %v1333_v18, 4 }
  0x4a   : > { %1609 = vmatpush.bf16.msrb.mxu2 %v4210_v36  ;;  %v1336_v36 = vrot.slane %v182_v0, 5 }
  0x4b   : > { %1865 = vmatpush.bf16.msrb.mxu3 %v4218_v37 }
  0x4c   : > { %1164 = vmatpush.bf16.msrb.mxu1 %v4202_v38  ;;  %2143 = vmatpush.bf16.msrb.mxu0 %v4226_v39  ;;  %v4734_v38 = vld [vmem:[%s4545_s26 + $0x18] sm:$0xf]  ;;  %v4737_v39 = vld [vmem:[%s4545_s26 + $0x1c] sm:$0xf] }
  0x4d   : > { %v676_v52 = vshrl.u32 %v4737_v39, 16 }
  0x4e   : > { %1610 = vmatpush.bf16.msrb.mxu2 %v4209_v40  ;;  %v646_v40 = vrot.slane %v645_v26, 4 }
  0x4f   : > { %1866 = vmatpush.bf16.msrb.mxu3 %v4217_v41  ;;  %v656_v41 = vrot.slane %v655_v27, 4  ;;  %v678_v0 = vrot.slane %v676_v52, 4 }
  0x50   : > { %1165 = vmatpush.bf16.msrb.mxu1 %v4201_v42  ;;  %2144 = vmatpush.bf16.msrb.mxu0 %v4225_v43  ;;  %v660_v42 = vrot.slane %v658_v28, 5  ;;  %v627_v43 = vsel %vm4723_vm4, %v622_v32, %v626_v7  ;;  %v651_v53 = vsel %vm4723_vm4, %v646_v40, %v650_v14  ;;  %v1342_v14 = vrot.slane %v1340_v5, 4 }
  0x51   : > { %v1049_v1 = vunpack.c.l.b16 %v651_v53 }
  0x52   : > { %1611 = vmatpush.bf16.msrb.mxu2 %v4208_v44  ;;  %v637_v44 = vsel %vm4723_vm4, %v632_v34, %v636_v24  ;;  %v1341_v24 = vsel %vm4728_vm5, %v3806_v13, %v1340_v5  ;;  %v696_v34 = vshll.u32 %v4776_v19, 16 }
  0x53   : > { %1867 = vmatpush.bf16.msrb.mxu3 %v4216_v45  ;;  %v1334_v45 = vsel %vm4728_vm5, %v3805_v25, %v1333_v18  ;;  %v684_v18 = vrot.slane %v682_v9, 5  ;;  %v1344_v25 = vsel %vm4728_vm5, %v1342_v14, %v1343_v15 }
  0x54   : > { %1166 = vmatpush.bf16.msrb.mxu1 %v4200_v46  ;;  %2145 = vmatpush.bf16.msrb.mxu0 %v4224_v47  ;;  %v1337_v46 = vsel %vm4728_vm5, %v1335_v35, %v1336_v36  ;;  %v663_v47 = vshrl.u32 %v4734_v38, 16  ;;  %v1492_v57 = vunpack.c.l.b16 %v1334_v45  ;;  %v700_v35 = vshrl.u32 %v4776_v19, 16 }
  0x55   : > { %496 = vmatmul.bf16.gmra.mxu1 %v4667_v48  ;;  %516 = vmatmul.bf16.gmra.mxu2 %v4184_v49  ;;  %v666_v49 = vshll.u32 %v4734_v38, 16  ;;  %v1493_v58 = vunpack.c.l.b16 %v1337_v46  ;;  %v1494_v36 = vunpack.c.l.b16 %v1341_v24  ;;  %v1495_v40 = vunpack.c.l.b16 %v1344_v25 }
  0x56   : > { %536 = vmatmul.bf16.gmra.mxu3 %v4188_v50  ;;  %2656 = vmatpush.bf16.msra.mxu2 %v4247_v54  ;;  %v672_v50 = vshll.u32 %v4737_v39, 16  ;;  %v661_v54 = vsel %vm4723_vm4, %v656_v41, %v660_v42  ;;  %v698_v45 = vrot.slane %v696_v34, 5  ;;  %v702_v46 = vrot.slane %v700_v35, 4 }
  0x57   : > { %476 = vmatmul.bf16.gmra.mxu0 %v4672_v51  ;;  %2934 = vmatpush.bf16.msra.mxu3 %v4255_v55  ;;  %v1047_v55 = vunpack.c.l.b16 %v627_v43  ;;  %v668_v60 = vrot.slane %v666_v49, 5  ;;  %v1050_v2 = vunpack.c.l.b16 %v661_v54  ;;  %v1524_v6 = vpack.c.b16 %v1493_v58, %v1492_v57 }
  0x58   : > { %2400 = vmatpush.bf16.msra.mxu1 %v4239_v56  ;;  %3196 = vmatpush.bf16.msra.mxu0 %v4263_v59  ;;  %v1048_v56 = vunpack.c.l.b16 %v637_v44  ;;  %v665_v59 = vrot.slane %v663_v47, 4  ;;  %v674_v61 = vrot.slane %v672_v50, 5  ;;  %v191_v47 = vld [vmem:[%s4545_s26 + $0x2c] sm:$0x1]  ;;  %v4794_v49 = vpack.c.b16 %v1495_v40, %v1494_v36 }
  0x59   : > { %v1080_v12 = vpack.c.b16 %v1050_v2, %v1049_v1  ;;  %v1347_v50 = vrot.slane %v4737_v39, 5  ;;  %v703_v54 = vor.u32 %v702_v46, %v698_v45  ;;  %v1350_v58 = vrot.slane %v4756_v3, 5 }
  0x5a   : > { %v1079_v4 = vpack.c.b16 %v1048_v56, %v1047_v55  ;;  %v669_v7 = vor.u32 %v668_v60, %v665_v59  ;;  %v679_v8 = vor.u32 %v678_v0, %v674_v61  ;;  %2657 = vmatpush.bf16.msra.mxu2 %v4246_v63  ;;  %v706_v55 = vshll.u32 %v191_v47, 16  ;;  %v4808_v0 = vld [vmem:[%s4545_s26 + $0x34] sm:$0xf] }
  0x5b   : > { %v3807_v56 = vrot.slane %v4734_v38, 9  ;;  %v1349_v57 = vrot.slane %v1347_v50, 4  ;;  %v704_v39 = vrot.slane %v703_v54, 4  ;;  %v720_v5 = vshll.u32 %v4808_v0, 16 }
  0x5c   : > { %v670_v16 = vrot.slane %v669_v7, 4  ;;  %v680_v17 = vrot.slane %v679_v8, 4  ;;  %2401 = vmatpush.bf16.msra.mxu1 %v4238_v62  ;;  %v708_v60 = vrot.slane %v706_v55, 5 }
  0x5d   : > { %v1348_v1 = vsel %vm4728_vm5, %v3807_v56, %v1347_v50  ;;  %v1351_v38 = vsel %vm4728_vm5, %v1349_v57, %v1350_v58  ;;  %v722_v15 = vrot.slane %v720_v5, 5  ;;  %v4261_v50 = vld [vmem:[%s5709_s1 + $0x228] sm:$0xff] }
  0x5e   : > { %v675_v26 = vsel %vm4723_vm4, %v670_v16, %v674_v61  ;;  %v685_v27 = vsel %vm4723_vm4, %v680_v17, %v684_v18  ;;  %v4805_v61 = vld [vmem:[%s4545_s26 + $0x30] sm:$0xf]  ;;  %v709_v2 = vsel %vm4723_vm4, %v704_v39, %v708_v60  ;;  %v1496_v7 = vunpack.c.l.b16 %v1348_v1  ;;  %v4824_v18 = vld [vmem:[%s4545_s26 + $0x38] sm:$0x1]  ;;  %v4867_v60 = vld [vmem:[%s4545_s26 + $0x44] sm:$0x1] }
  0x5f   : > { %v1051_v41 = vunpack.c.l.b16 %v675_v26  ;;  %v1052_v42 = vunpack.c.l.b16 %v685_v27  ;;  %v711_v3 = vshrl.u32 %v4805_v61, 16  ;;  %v1497_v8 = vunpack.c.l.b16 %v1351_v38 }
  0x60   : > { %v1354_v17 = vrot.slane %v4776_v19, 5  ;;  %v730_v24 = vshll.u32 %v4824_v18, 16  ;;  %v1357_v27 = vrot.slane %v191_v47, 5  ;;  %v4835_v19 = vld [vmem:[%s4545_s26 + $0x3c] sm:$0xf]  ;;  %v1361_v1 = vrot.slane %v4808_v0, 5 }
  0x61   : > { %v4797_v52 = vpack.c.b16 %v1052_v42, %v1051_v41  ;;  %v713_v13 = vrot.slane %v711_v3, 4  ;;  %v4826_v63 = vpack.c.b16 %v1497_v8, %v1496_v7  ;;  %v735_v41 = vshrl.u32 %v4835_v19, 16 }
  0x62   : > { %v1356_v26 = vrot.slane %v1354_v17, 4  ;;  %v732_v36 = vrot.slane %v730_v24, 5  ;;  %v738_v42 = vshll.u32 %v4835_v19, 16  ;;  %v754_v3 = vshll.u32 %v4867_v60, 16 }
  0x63   : > { %v737_v55 = vrot.slane %v735_v41, 4  ;;  %v3809_v5 = vrot.slane %v4805_v61, 9  ;;  %v1364_v7 = vrot.slane %v4824_v18, 5 }
  0x64   : > { %v740_v56 = vrot.slane %v738_v42, 5 }
  0x65   : > { %501 = vmatmul.bf16.gmra.mxu1 %v4714_v20  ;;  %521 = vmatmul.bf16.gmra.mxu2 %v4185_v21  ;;  %v4254_v21 = vld [vmem:[%s5709_s1 + $0x1f0] sm:$0xff] }
  0x66   : > { %541 = vmatmul.bf16.gmra.mxu3 %v4189_v22  ;;  %v4773_v22 = vld [vmem:[%s4545_s26 + $0x24] sm:$0xf] }
  0x67   : > { %481 = vmatmul.bf16.gmra.mxu0 %v4719_v23  ;;  %2935 = vmatpush.bf16.msra.mxu3 %v4254_v21  ;;  %v687_v28 = vshrl.u32 %v4773_v22, 16  ;;  %v690_v32 = vshll.u32 %v4773_v22, 16  ;;  %v3808_v25 = vrot.slane %v4773_v22, 9  ;;  %v4253_v22 = vld [vmem:[%s5709_s1 + $0x1e8] sm:$0xff] }
  0x69   : > { %v689_v43 = vrot.slane %v687_v28, 4  ;;  %v692_v44 = vrot.slane %v690_v32, 5  ;;  %v4245_v28 = vld [vmem:[%s5709_s1 + $0x1a8] sm:$0xff]  ;;  %v4843_v32 = vld [vmem:[%s4545_s26 + $0x40] sm:$0xf]  ;;  %v1355_v40 = vsel %vm4728_vm5, %v3808_v25, %v1354_v17 }
  0x6a   : > { %2658 = vmatpush.bf16.msra.mxu2 %v4245_v28 }
  0x6b   : > { %v693_v53 = vor.u32 %v692_v44, %v689_v43  ;;  %2936 = vmatpush.bf16.msra.mxu3 %v4253_v22  ;;  %v744_v43 = vshll.u32 %v4843_v32, 16  ;;  %v748_v44 = vshrl.u32 %v4843_v32, 16 }
  0x6d   : > { %v694_v59 = vrot.slane %v693_v53, 4  ;;  %v1498_v53 = vunpack.c.l.b16 %v1355_v40  ;;  %v746_v57 = vrot.slane %v744_v43, 5  ;;  %v750_v58 = vrot.slane %v748_v44, 4 }
  0x6e   : > { %v1368_v40 = vrot.slane %v4843_v32, 5  ;;  %v1371_v32 = vrot.slane %v4867_v60, 5 }
  0x75   : > { %1167 = vmatmul.bf16.vlgmr.msrb.gmra.mxu1 %v1079_v4  ;;  %1612 = vmatmul.bf16.vlgmr.msrb.gmra.mxu2 %v1524_v6  ;;  %v714_v4 = vshll.u32 %v4805_v61, 16  ;;  %v724_v6 = vshrl.u32 %v4808_v0, 16  ;;  %v1362_v61 = vsel %vm4728_vm5, %v3809_v5, %v1361_v1 }
  0x76   : > { %1868 = vmatmul.bf16.vlgmr.msrb.gmra.mxu3 %v4619_v33  ;;  %v4262_v33 = vld [vmem:[%s5709_s1 + $0x230] sm:$0xff] }
  0x77   : > { %2146 = vmatmul.bf16.vlgmr.msrb.gmra.mxu0 %v1080_v12  ;;  %v716_v14 = vrot.slane %v714_v4, 5  ;;  %v726_v16 = vrot.slane %v724_v6, 4  ;;  %v1363_v6 = vrot.slane %v1361_v1, 4 }
  0x78   : > { %3197 = vmatpush.bf16.msra.mxu0 %v4262_v33 }
  0x79   : > { %v717_v62 = vor.u32 %v716_v14, %v713_v13  ;;  %v727_v33 = vor.u32 %v726_v16, %v722_v15  ;;  %v4885_v13 = vld [vmem:[%s4545_s26 + $0x4c] sm:$0xf]  ;;  %v1365_v14 = vsel %vm4728_vm5, %v1363_v6, %v1364_v7 }
  0x7a   : > { %v768_v18 = vshll.u32 %v4885_v13, 16  ;;  %v1501_v24 = vunpack.c.l.b16 %v1365_v14 }
  0x7b   : > { %v718_v34 = vrot.slane %v717_v62, 4  ;;  %v728_v35 = vrot.slane %v727_v33, 4  ;;  %v772_v62 = vshrl.u32 %v4885_v13, 16  ;;  %v1500_v33 = vunpack.c.l.b16 %v1362_v61 }
  0x7c   : > { %3198 = vmatpush.bf16.msra.mxu0 %v4261_v50  ;;  %v770_v22 = vrot.slane %v768_v18, 5 }
  0x7d   : > { %v723_v46 = vsel %vm4723_vm4, %v718_v34, %v722_v15  ;;  %v733_v47 = vsel %vm4723_vm4, %v728_v35, %v732_v36  ;;  %v774_v34 = vrot.slane %v772_v62, 4  ;;  %v4900_v35 = vld [vmem:[%s4545_s26 + $0x50] sm:$0x1]  ;;  %v4902_v36 = vpack.c.b16 %v1501_v24, %v1500_v33  ;;  %v4960_v24 = vld [vmem:[%s4545_s26 + $0x5c] sm:$0x1] }
  0x7e   : > { %v1056_v39 = vunpack.c.l.b16 %v733_v47  ;;  %v778_v44 = vshll.u32 %v4900_v35, 16  ;;  %v1370_v47 = vrot.slane %v1368_v40, 4  ;;  %v1375_v33 = vrot.slane %v4885_v13, 5 }
  0x7f   : > { %v775_v43 = vor.u32 %v774_v34, %v770_v22 }
  0x80   : > { %v1372_v1 = vsel %vm4728_vm5, %v1370_v47, %v1371_v32  ;;  %v4983_v47 = vld [vmem:[%s4545_s26 + $0x64] sm:$0xf] }
  0x81   : > { %v1503_v61 = vunpack.c.l.b16 %v1372_v1 }
  0x85   : > { %1172 = vmatmul.bf16.gmra.mxu1 %v1080_v12  ;;  %1617 = vmatmul.bf16.gmra.mxu2 %v4794_v49  ;;  %v1054_v12 = vunpack.c.l.b16 %v709_v2  ;;  %v751_v2 = vor.u32 %v750_v58, %v746_v57 }
  0x86   : > { %1873 = vmatmul.bf16.gmra.mxu3 %v4672_v51  ;;  %v699_v51 = vsel %vm4723_vm4, %v694_v59, %v698_v45  ;;  %v4237_v45 = vld [vmem:[%s5709_s1 + $0x168] sm:$0xff]  ;;  %v1055_v59 = vunpack.c.l.b16 %v723_v46  ;;  %v3810_v46 = vrot.slane %v4835_v19, 9  ;;  %v4927_v19 = vld [vmem:[%s4545_s26 + $0x54] sm:$0xf] }
  0x87   : > { %2151 = vmatmul.bf16.gmra.mxu0 %v4797_v52  ;;  %v1053_v9 = vunpack.c.l.b16 %v699_v51  ;;  %2402 = vmatpush.bf16.msra.mxu1 %v4237_v45  ;;  %v741_v51 = vor.u32 %v740_v56, %v737_v55  ;;  %v752_v8 = vrot.slane %v751_v2, 4  ;;  %v4244_v55 = vld [vmem:[%s5709_s1 + $0x1a0] sm:$0xff]  ;;  %v783_v5 = vshrl.u32 %v4927_v19, 16 }
  0x88   : > { %v4873_v4 = vpack.c.b16 %v1056_v39, %v1055_v59  ;;  %v4252_v56 = vld [vmem:[%s5709_s1 + $0x1e0] sm:$0xff]  ;;  %2659 = vmatpush.bf16.msra.mxu2 %v4244_v55  ;;  %v1369_v60 = vsel %vm4728_vm5, %v3810_v46, %v1368_v40  ;;  %v786_v6 = vshll.u32 %v4927_v19, 16 }
  0x89   : > { %v4828_v21 = vpack.c.b16 %v1054_v12, %v1053_v9  ;;  %v742_v0 = vrot.slane %v741_v51, 4  ;;  %v756_v9 = vrot.slane %v754_v3, 5  ;;  %v4882_v12 = vld [vmem:[%s4545_s26 + $0x48] sm:$0xf]  ;;  %2937 = vmatpush.bf16.msra.mxu3 %v4252_v56  ;;  %v4236_v59 = vld [vmem:[%s5709_s1 + $0x160] sm:$0xff] }
  0x8a   : > { %v762_v17 = vshll.u32 %v4882_v12, 16  ;;  %v3811_v13 = vrot.slane %v4882_v12, 9  ;;  %v4980_v46 = vld [vmem:[%s4545_s26 + $0x60] sm:$0xf] }
  0x8b   : > { %v747_v15 = vsel %vm4723_vm4, %v742_v0, %v746_v57  ;;  %v757_v16 = vsel %vm4723_vm4, %v752_v8, %v756_v9  ;;  %2403 = vmatpush.bf16.msra.mxu1 %v4236_v59  ;;  %v4260_v8 = vld [vmem:[%s5709_s1 + $0x220] sm:$0xff]  ;;  %v1502_v9 = vunpack.c.l.b16 %v1369_v60  ;;  %v810_v56 = vshll.u32 %v4980_v46, 16 }
  0x8c   : > { %v1057_v25 = vunpack.c.l.b16 %v747_v15  ;;  %v764_v28 = vrot.slane %v762_v17, 5  ;;  %3199 = vmatpush.bf16.msra.mxu0 %v4260_v8  ;;  %v816_v59 = vshll.u32 %v4983_v47, 16  ;;  %v820_v60 = vshrl.u32 %v4983_v47, 16 }
  0x8d   : > { %v812_v8 = vrot.slane %v810_v56, 5  ;;  %v5035_v56 = vld [vmem:[%s4545_s26 + $0x6c] sm:$0xf] }
  0x95   : > { %1177 = vmatmul.bf16.gmra.mxu1 %v4797_v52  ;;  %1622 = vmatmul.bf16.gmra.mxu2 %v4826_v63 }
  0x96   : > { %1878 = vmatmul.bf16.gmra.mxu3 %v4719_v23  ;;  %v1358_v23 = vsel %vm4728_vm5, %v1356_v26, %v1357_v27  ;;  %v1058_v26 = vunpack.c.l.b16 %v757_v16  ;;  %v785_v16 = vrot.slane %v783_v5, 4 }
  0x97   : > { %2156 = vmatmul.bf16.gmra.mxu0 %v4828_v21  ;;  %v1499_v54 = vunpack.c.l.b16 %v1358_v23 }
  0x98   : > { %v4907_v41 = vpack.c.b16 %v1058_v26, %v1057_v25  ;;  %v4964_v26 = vpack.c.b16 %v1503_v61, %v1502_v9  ;;  %v818_v9 = vrot.slane %v816_v59, 5  ;;  %v822_v61 = vrot.slane %v820_v60, 4  ;;  %v5038_v59 = vld [vmem:[%s4545_s26 + $0x70] sm:$0xf] }
  0x99   : > { %v4870_v38 = vpack.c.b16 %v1499_v54, %v1498_v53  ;;  %v776_v53 = vrot.slane %v775_v43, 4  ;;  %v780_v54 = vrot.slane %v778_v44, 5  ;;  %v1377_v43 = vrot.slane %v1375_v33, 4 }
  0x9a   : > { %5738 = vst [vmem:[#allocation11_spill] sm:$0xff] %v4964_v26  ;;  %v1378_v44 = vrot.slane %v4900_v35, 5 }
  0x9b   : > { %v781_v2 = vsel %vm4723_vm4, %v776_v53, %v780_v54 }
  0x9c   : > { %v1060_v15 = vunpack.c.l.b16 %v781_v2  ;;  %v1379_v35 = vsel %vm4728_vm5, %v1377_v43, %v1378_v44 }
  0xa5   : > { %1182 = vmatmul.bf16.gmra.mxu1 %v4828_v21  ;;  %1627 = vmatmul.bf16.gmra.mxu2 %v4870_v38 }
  0xa6   : > { %1883 = vmatmul.bf16.gmra.mxu3 %v4554_v10  ;;  %v759_v10 = vshrl.u32 %v4882_v12, 16  ;;  %v1376_v12 = vsel %vm4728_vm5, %v3811_v13, %v1375_v33 }
  0xa7   : > { %2161 = vmatmul.bf16.gmra.mxu0 %v4873_v4 }
  0xa8   : > { %v761_v27 = vrot.slane %v759_v10, 4  ;;  %v788_v10 = vrot.slane %v786_v6, 5  ;;  %v1504_v6 = vunpack.c.l.b16 %v1376_v12 }
  0xaa   : > { %v765_v42 = vor.u32 %v764_v28, %v761_v27  ;;  %v789_v34 = vor.u32 %v788_v10, %v785_v16  ;;  %v5006_v16 = vld [vmem:[%s4545_s26 + $0x68] sm:$0x1] }
  0xac   : > { %v766_v50 = vrot.slane %v765_v42, 4  ;;  %v802_v42 = vshll.u32 %v4960_v24, 16  ;;  %v790_v32 = vrot.slane %v789_v34, 4 }
  0xae   : > { %v771_v51 = vsel %vm4723_vm4, %v766_v50, %v770_v22  ;;  %v804_v53 = vrot.slane %v802_v42, 5  ;;  %v826_v42 = vshll.u32 %v5006_v16, 16 }
  0xaf   : > { %v1059_v14 = vunpack.c.l.b16 %v771_v51 }
  0xb1   : > { %v4968_v28 = vpack.c.b16 %v1060_v15, %v1059_v14 }
  0xb2   : > { %v4905_v23 = vpop.f32.mrf.mxu1 }
  0xb3   : > { %5739 = vst [vmem:[#allocation12_spill] sm:$0xff] %v4968_v28 }
  0xb4   : > { %v4910_v45 = vpop.f32.mrf.mxu0 }
  0xb5   : > { %1187 = vmatmul.bf16.gmra.mxu1 %v4873_v4  ;;  %1632 = vmatmul.bf16.gmra.mxu2 %v4902_v36 }
  0xb6   : > { %1888 = vmatmul.bf16.gmra.mxu3 %v4612_v30  ;;  %v4930_v30 = vld [vmem:[%s4545_s26 + $0x58] sm:$0xf] }
  0xb7   : > { %2166 = vmatmul.bf16.gmra.mxu0 %v4907_v41  ;;  %v792_v7 = vshll.u32 %v4930_v30, 16  ;;  %v796_v0 = vshrl.u32 %v4930_v30, 16 }
  0xb8   : > { %v4924_v57 = vpop.f32.mrf.mxu2 }
  0xb9   : > { %v4932_v58 = vpop.f32.mrf.mxu3  ;;  %v794_v17 = vrot.slane %v792_v7, 5  ;;  %v798_v18 = vrot.slane %v796_v0, 4  ;;  %v1505_v7 = vunpack.c.l.b16 %v1379_v35  ;;  %v828_v35 = vrot.slane %v826_v42, 5 }
  0xba   : > { %5736 = vst [vmem:[#allocation9_spill] sm:$0xff] %v4932_v58  ;;  %v4937_v39 = vpop.f32.mrf.mxu1 }
  0xbb   : > { %v799_v40 = vor.u32 %v798_v18, %v794_v17  ;;  %v795_v2 = vsel %vm4723_vm4, %v790_v32, %v794_v17  ;;  %v1382_v18 = vrot.slane %v4930_v30, 5  ;;  %v5013_v17 = vpack.c.b16 %v1505_v7, %v1504_v6 }
  0xbc   : > { %v4947_v3 = vpop.f32.mrf.mxu0  ;;  %v1061_v14 = vunpack.c.l.b16 %v795_v2  ;;  %v3812_v32 = vrot.slane %v4927_v19, 9  ;;  %v1385_v30 = vrot.slane %v4960_v24, 5  ;;  %v4251_v19 = vld [vmem:[%s5709_s1 + $0x1d8] sm:$0xff] }
  0xbd   : > { %v800_v50 = vrot.slane %v799_v40, 4  ;;  %5742 = vst [vmem:[#allocation15_spill] sm:$0xff] %v5013_v17  ;;  %v823_v40 = vor.u32 %v822_v61, %v818_v9  ;;  %2938 = vmatpush.bf16.msra.mxu3 %v4251_v19  ;;  %v840_v61 = vshll.u32 %v5038_v59, 16 }
  0xbf   : > { %v805_v5 = vsel %vm4723_vm4, %v800_v50, %v804_v53  ;;  %v1384_v50 = vrot.slane %v1382_v18, 4  ;;  %v824_v12 = vrot.slane %v823_v40, 4 }
  0xc0   : > { %v4956_v62 = vpop.f32.mrf.mxu2  ;;  %v1062_v15 = vunpack.c.l.b16 %v805_v5 }
  0xc1   : > { %v4962_v25 = vpop.f32.mrf.mxu3  ;;  %v1386_v2 = vsel %vm4728_vm5, %v1384_v50, %v1385_v30  ;;  %v829_v6 = vsel %vm4723_vm4, %v824_v12, %v828_v35  ;;  %v5067_v35 = vld [vmem:[%s4545_s26 + $0x74] sm:$0x1] }
  0xc2   : > { %5737 = vst [vmem:[#allocation10_spill] sm:$0xff] %v4962_v25  ;;  %v4966_v27 = vpop.f32.mrf.mxu1  ;;  %v5018_v43 = vpack.c.b16 %v1062_v15, %v1061_v14  ;;  %v844_v14 = vshrl.u32 %v5038_v59, 16  ;;  %v1507_v40 = vunpack.c.l.b16 %v1386_v2 }
  0xc4   : > { %v4970_v22 = vpop.f32.mrf.mxu0  ;;  %5743 = vst [vmem:[#allocation16_spill] sm:$0xff] %v5018_v43  ;;  %v846_v12 = vrot.slane %v844_v14, 4 }
  0xc5   : > { %1192 = vmatmul.bf16.gmra.mxu1 %v4907_v41  ;;  %1637 = vmatmul.bf16.gmra.mxu2 %v4964_v26 }
  0xc6   : > { %1893 = vmatmul.bf16.gmra.mxu3 %v4667_v48  ;;  %v807_v48 = vshrl.u32 %v4980_v46, 16 }
  0xc7   : > { %2171 = vmatmul.bf16.gmra.mxu0 %v4968_v28 }
  0xc8   : > { %v4985_v54 = vpop.f32.mrf.mxu2  ;;  %v809_v0 = vrot.slane %v807_v48, 4  ;;  %v4243_v48 = vld [vmem:[%s5709_s1 + $0x198] sm:$0xff] }
  0xc9   : > { %v4991_v55 = vpop.f32.mrf.mxu3  ;;  %2660 = vmatpush.bf16.msra.mxu2 %v4243_v48 }
  0xca   : > { %5740 = vst [vmem:[#allocation13_spill] sm:$0xff] %v4991_v55  ;;  %v4997_v1 = vpop.f32.mrf.mxu1  ;;  %v813_v34 = vor.u32 %v812_v8, %v809_v0  ;;  %v831_v0 = vshrl.u32 %v5035_v56, 16  ;;  %v834_v8 = vshll.u32 %v5035_v56, 16 }
  0xcc   : > { %v4999_v51 = vpop.f32.mrf.mxu0  ;;  %v814_v53 = vrot.slane %v813_v34, 4  ;;  %v833_v50 = vrot.slane %v831_v0, 4  ;;  %v836_v30 = vrot.slane %v834_v8, 5  ;;  %v850_v0 = vshll.u32 %v5067_v35, 16 }
  0xce   : > { %v819_v5 = vsel %vm4723_vm4, %v814_v53, %v818_v9  ;;  %v4235_v9 = vld [vmem:[%s5709_s1 + $0x158] sm:$0xff]  ;;  %v842_v53 = vrot.slane %v840_v61, 5  ;;  %v3813_v61 = vrot.slane %v4980_v46, 9 }
  0xcf   : > { %v1063_v42 = vunpack.c.l.b16 %v819_v5  ;;  %2404 = vmatpush.bf16.msra.mxu1 %v4235_v9  ;;  %v837_v5 = vor.u32 %v836_v30, %v833_v50 }
  0xd0   : > { %v5008_v10 = vpop.f32.mrf.mxu2 }
  0xd1   : > { %v5011_v33 = vpop.f32.mrf.mxu3  ;;  %v838_v9 = vrot.slane %v837_v5, 4 }
  0xd2   : > { %5741 = vst [vmem:[#allocation14_spill] sm:$0xff] %v5011_v33  ;;  %v5016_v13 = vpop.f32.mrf.mxu1  ;;  %v1389_v33 = vrot.slane %v4983_v47, 5  ;;  %v1392_v47 = vrot.slane %v5006_v16, 5 }
  0xd3   : > { %v843_v16 = vsel %vm4723_vm4, %v838_v9, %v842_v53 }
  0xd4   : > { %v5020_v44 = vpop.f32.mrf.mxu0  ;;  %v1391_v14 = vrot.slane %v1389_v33, 4 }
  0xd5   : > { %1197 = vmatmul.bf16.gmra.mxu1 %v4968_v28  ;;  %1642 = vmatmul.bf16.gmra.mxu2 %v5013_v17 }
  0xd6   : > { %1898 = vmatmul.bf16.gmra.mxu3 %v4714_v20  ;;  %v1383_v20 = vsel %vm4728_vm5, %v3812_v32, %v1382_v18  ;;  %v4259_v18 = vld [vmem:[%s5709_s1 + $0x218] sm:$0xff]  ;;  %v1064_v32 = vunpack.c.l.b16 %v829_v6  ;;  %v847_v6 = vor.u32 %v846_v12, %v842_v53  ;;  %v1393_v46 = vsel %vm4728_vm5, %v1391_v14, %v1392_v47 }
  0xd7   : > { %2176 = vmatmul.bf16.gmra.mxu0 %v5018_v43  ;;  %v1506_v34 = vunpack.c.l.b16 %v1383_v20  ;;  %v1065_v14 = vunpack.c.l.b16 %v843_v16 }
  0xd8   : > { %v5040_v24 = vpop.f32.mrf.mxu2  ;;  %3200 = vmatpush.bf16.msra.mxu0 %v4259_v18  ;;  %v5078_v2 = vpack.c.b16 %v1064_v32, %v1063_v42  ;;  %v848_v18 = vrot.slane %v847_v6, 4  ;;  %v5092_v42 = vld [vmem:[%s4545_s26 + $0x78] sm:$0xf]  ;;  %v5095_v32 = vld [vmem:[%s4545_s26 + $0x7c] sm:$0xf] }
  0xd9   : > { %v5042_v60 = vpop.f32.mrf.mxu3  ;;  %v855_v6 = vshrl.u32 %v5092_v42, 16 }
  0xda   : > { %5744 = vst [vmem:[#allocation17_spill] sm:$0xff] %v5042_v60  ;;  %v5052_v7 = vpop.f32.mrf.mxu1  ;;  %v5073_v60 = vpack.c.b16 %v1507_v40, %v1506_v34  ;;  %v852_v34 = vrot.slane %v850_v0, 5  ;;  %v858_v0 = vshll.u32 %v5092_v42, 16 }
  0xdb   : > { %5747 = vst [vmem:[#allocation20_spill] sm:$0xff] %v5078_v2  ;;  %v857_v55 = vrot.slane %v855_v6, 4 }
  0xdc   : > { %v5058_v15 = vpop.f32.mrf.mxu0  ;;  %5746 = vst [vmem:[#allocation19_spill] sm:$0xff] %v5073_v60  ;;  %v853_v12 = vsel %vm4723_vm4, %v848_v18, %v852_v34  ;;  %v860_v53 = vrot.slane %v858_v0, 5  ;;  %v1396_v34 = vrot.slane %v5038_v59, 5  ;;  %v3814_v59 = vrot.slane %v5035_v56, 9 }
  0xdd   : > { %v1066_v47 = vunpack.c.l.b16 %v853_v12 }
  0xde   : > { %v1398_v0 = vrot.slane %v1396_v34, 4 }
  0xe0   : > { %v5069_v48 = vpop.f32.mrf.mxu2 }
  0xe1   : > { %v5071_v19 = vpop.f32.mrf.mxu3 }
  0xe2   : > { %5745 = vst [vmem:[#allocation18_spill] sm:$0xff] %v5071_v19  ;;  %v5076_v20 = vpop.f32.mrf.mxu1  ;;  %v1509_v19 = vunpack.c.l.b16 %v1393_v46 }
  0xe4   : > { %v5081_v8 = vpop.f32.mrf.mxu0 }
  0xe5   : > { %1202 = vmatmul.bf16.gmra.mxu1 %v5018_v43  ;;  %1647 = vmatmul.bf16.gmra.mxu2 %v5073_v60  ;;  %v5119_v43 = vld [vmem:[%s4545_s26 + $0x80] sm:$0x1] }
  0xe6   : > { %1903 = vmatmul.bf16.gmra.mxu3 %v4557_v11  ;;  %v1390_v11 = vsel %vm4728_vm5, %v3813_v61, %v1389_v33  ;;  %v868_v33 = vshrl.u32 %v5095_v32, 16  ;;  %v874_v6 = vshll.u32 %v5119_v43, 16 }
  0xe7   : > { %2181 = vmatmul.bf16.gmra.mxu0 %v5078_v2  ;;  %v1508_v61 = vunpack.c.l.b16 %v1390_v11  ;;  %v5125_v11 = vpack.c.b16 %v1066_v47, %v1065_v14  ;;  %v1397_v14 = vsel %vm4728_vm5, %v3814_v59, %v1396_v34 }
  0xe8   : > { %v5089_v40 = vpop.f32.mrf.mxu2  ;;  %v870_v60 = vrot.slane %v868_v33, 4  ;;  %v1399_v33 = vrot.slane %v5067_v35, 5  ;;  %v876_v35 = vrot.slane %v874_v6, 5 }
  0xe9   : > { %5748 = vst [vmem:[#allocation21_spill] sm:$0xff] %v5089_v40  ;;  %v5097_v50 = vpop.f32.mrf.mxu3  ;;  %v5123_v58 = vpack.c.b16 %v1509_v19, %v1508_v61  ;;  %v5134_v19 = vld [vmem:[%s4545_s26 + $0x84] sm:$0xf]  ;;  %v1403_v40 = vrot.slane %v5095_v32, 5 }
  0xea   : > { %5749 = vst [vmem:[#allocation22_spill] sm:$0xff] %v5097_v50  ;;  %v5099_v30 = vpop.f32.mrf.mxu1  ;;  %v864_v50 = vshll.u32 %v5095_v32, 16  ;;  %v879_v47 = vshrl.u32 %v5134_v19, 16 }
  0xeb   : > { %5752 = vst [vmem:[#allocation25_spill] sm:$0xff] %v5123_v58 }
  0xec   : > { %v5109_v5 = vpop.f32.mrf.mxu0  ;;  %v866_v9 = vrot.slane %v864_v50, 5  ;;  %5753 = vst [vmem:[#allocation26_spill] sm:$0xff] %v5125_v11  ;;  %v861_v50 = vor.u32 %v860_v53, %v857_v55  ;;  %v5142_v55 = vld [vmem:[%s4545_s26 + $0x88] sm:$0xf] }
  0xee   : > { %v871_v12 = vor.u32 %v870_v60, %v866_v9  ;;  %v862_v56 = vrot.slane %v861_v50, 4  ;;  %v892_v50 = vshrl.u32 %v5142_v55, 16 }
  0xf0   : > { %v5115_v18 = vpop.f32.mrf.mxu2  ;;  %v872_v60 = vrot.slane %v871_v12, 4  ;;  %v867_v59 = vsel %vm4723_vm4, %v862_v56, %v866_v9 }
  0xf1   : > { %5750 = vst [vmem:[#allocation23_spill] sm:$0xff] %v5115_v18  ;;  %v5121_v25 = vpop.f32.mrf.mxu3  ;;  %v1067_v56 = vunpack.c.l.b16 %v867_v59 }
  0xf2   : > { %5751 = vst [vmem:[#allocation24_spill] sm:$0xff] %v5121_v25  ;;  %v1168_v17 = vpop.f32.mrf.mxu1 }
  0xf3   : > { %v1248_v46 = vadd.f32 %v1168_v17, %v4910_v45  ;;  %v4242_v45 = vld [vmem:[%s5709_s1 + $0x190] sm:$0xff] }
  0xf4   : > { %v2147_v16 = vpop.f32.mrf.mxu0  ;;  %v4250_v17 = vld [vmem:[%s5709_s1 + $0x1d0] sm:$0xff]  ;;  %2661 = vmatpush.bf16.msra.mxu2 %v4242_v45  ;;  %v1510_v45 = vunpack.c.l.b16 %v1397_v14 }
  0xf5   : > { %1207 = vmatmul.bf16.gmra.mxu1 %v5078_v2  ;;  %1652 = vmatmul.bf16.gmra.mxu2 %v5123_v58  ;;  %v882_v58 = vshll.u32 %v5134_v19, 16  ;;  %v888_v2 = vshll.u32 %v5142_v55, 16 }
  0xf6   : > { %1908 = vmatmul.bf16.gmra.mxu3 %v4615_v31  ;;  %v1400_v31 = vsel %vm4728_vm5, %v1398_v0, %v1399_v33  ;;  %v877_v0 = vsel %vm4723_vm4, %v872_v60, %v876_v35  ;;  %v4258_v33 = vld [vmem:[%s5709_s1 + $0x210] sm:$0xff]  ;;  %v5169_v35 = vld [vmem:[%s4545_s26 + $0x8c] sm:$0x1] }
  0xf7   : > { %2186 = vmatmul.bf16.gmra.mxu0 %v5125_v11  ;;  %2939 = vmatpush.bf16.msra.mxu3 %v4250_v17  ;;  %v881_v17 = vrot.slane %v879_v47, 4  ;;  %v1068_v60 = vunpack.c.l.b16 %v877_v0  ;;  %v3815_v0 = vrot.slane %v5092_v42, 9 }
  0xf8   : > { %v1613_v61 = vpop.f32.mrf.mxu2  ;;  %3201 = vmatpush.bf16.msra.mxu0 %v4258_v33 }
  0xf9   : > { %v1693_v53 = vadd.f32 %v1613_v61, %v1248_v46  ;;  %v1869_v25 = vpop.f32.mrf.mxu3  ;;  %v4234_v46 = vld [vmem:[%s5709_s1 + $0x150] sm:$0xff]  ;;  %v890_v61 = vrot.slane %v888_v2, 5  ;;  %v1404_v42 = vsel %vm4728_vm5, %v3815_v0, %v1403_v40 }
  0xfa   : > { %v1170_v12 = vpop.f32.mrf.mxu1  ;;  %2405 = vmatpush.bf16.msra.mxu1 %v4234_v46  ;;  %v1405_v46 = vrot.slane %v1403_v40, 4 }
  0xfb   : > { %v1949_v6 = vadd.f32 %v1869_v25, %v1693_v53  ;;  %v1249_v28 = vadd.f32 %v1170_v12, %v4947_v3  ;;  %v1511_v25 = vunpack.c.l.b16 %v1400_v31  ;;  %v884_v3 = vrot.slane %v882_v58, 5 }
  0xfc   : > { %v2149_v34 = vpop.f32.mrf.mxu0  ;;  %v894_v53 = vrot.slane %v892_v50, 4  ;;  %v898_v58 = vshll.u32 %v5169_v35, 16  ;;  %v5175_v50 = vpack.c.b16 %v1068_v60, %v1067_v56 }
  0xfd   : > { %v5166_v9 = vadd.f32 %v2147_v16, %v1949_v6  ;;  %v5171_v18 = vpack.c.b16 %v1511_v25, %v1510_v45  ;;  %v885_v31 = vor.u32 %v884_v3, %v881_v17  ;;  %v5185_v17 = vld [vmem:[%s4545_s26 + $0x78] sm:$0xff] }
  0xfe   : > { %v895_v47 = vor.u32 %v894_v53, %v890_v61  ;;  %v900_v45 = vrot.slane %v898_v58, 5  ;;  %5757 = vst [vmem:[#allocation30_spill] sm:$0xff] %v5185_v17 }
  0xff   : > { %5754 = vst [vmem:[#allocation27_spill] sm:$0xff] %v5166_v9  ;;  %v886_v32 = vrot.slane %v885_v31, 4 }
 0x100   : > { %v1615_v12 = vpop.f32.mrf.mxu2  ;;  %5755 = vst [vmem:[#allocation28_spill] sm:$0xff] %v5171_v18  ;;  %v896_v33 = vrot.slane %v895_v47, 4 }
 0x101   : > { %v1694_v26 = vadd.f32 %v1615_v12, %v1249_v28  ;;  %v1871_v14 = vpop.f32.mrf.mxu3  ;;  %v1406_v28 = vrot.slane %v5119_v43, 5  ;;  %v891_v56 = vsel %vm4723_vm4, %v886_v32, %v890_v61 }
 0x102   : > { %v1173_v2 = vpop.f32.mrf.mxu1  ;;  %v901_v60 = vsel %vm4723_vm4, %v896_v33, %v900_v45  ;;  %v1069_v61 = vunpack.c.l.b16 %v891_v56 }
 0x103   : > { %v1950_v16 = vadd.f32 %v1871_v14, %v1694_v26  ;;  %v1250_v6 = vadd.f32 %v1173_v2, %v4970_v22  ;;  %v5190_v26 = vld [vmem:[%s4545_s26 + $0x90] sm:$0xf]  ;;  %v5193_v22 = vld [vmem:[%s4545_s26 + $0x94] sm:$0xf] }
 0x104   : > { %v2152_v59 = vpop.f32.mrf.mxu0  ;;  %v903_v14 = vshrl.u32 %v5190_v26, 16  ;;  %v906_v31 = vshll.u32 %v5190_v26, 16  ;;  %v912_v47 = vshll.u32 %v5193_v22, 16  ;;  %v916_v40 = vshrl.u32 %v5193_v22, 16 }
 0x105   : > { %1212 = vmatmul.bf16.gmra.mxu1 %v5125_v11  ;;  %1657 = vmatmul.bf16.gmra.mxu2 %v5171_v18  ;;  %v5182_v25 = vadd.f32 %v2149_v34, %v1950_v16  ;;  %v1407_v34 = vsel %vm4728_vm5, %v1405_v46, %v1406_v28  ;;  %v1070_v46 = vunpack.c.l.b16 %v901_v60 }
 0x106   : > { %1913 = vmatmul.bf16.gmra.mxu3 %v5185_v17  ;;  %v1513_v0 = vunpack.c.l.b16 %v1407_v34  ;;  %v905_v32 = vrot.slane %v903_v14, 4  ;;  %v908_v33 = vrot.slane %v906_v31, 5  ;;  %v914_v45 = vrot.slane %v912_v47, 5  ;;  %v5227_v47 = vld [vmem:[%s4545_s26 + $0x84] sm:$0xff] }
 0x107   : > { %5756 = vst [vmem:[#allocation29_spill] sm:$0xff] %v5182_v25  ;;  %2191 = vmatmul.bf16.gmra.mxu0 %v5175_v50  ;;  %v5211_v25 = vld [vmem:[%s4545_s26 + $0x98] sm:$0x1]  ;;  %v1413_v14 = vrot.slane %v5169_v35, 5  ;;  %v5238_v35 = vld [vmem:[%s4545_s26 + $0x9c] sm:$0xf] }
 0x108   : > { %v1618_v43 = vpop.f32.mrf.mxu2  ;;  %v922_v34 = vshll.u32 %v5211_v25, 16 }
 0x109   : > { %v1695_v3 = vadd.f32 %v1618_v43, %v1250_v6  ;;  %v1874_v53 = vpop.f32.mrf.mxu3  ;;  %v1512_v6 = vunpack.c.l.b16 %v1404_v42  ;;  %v918_v43 = vrot.slane %v916_v40, 4  ;;  %v4241_v40 = vld [vmem:[%s5709_s1 + $0x188] sm:$0xff] }
 0x10a   : > { %v1175_v12 = vpop.f32.mrf.mxu1  ;;  %2662 = vmatpush.bf16.msra.mxu2 %v4241_v40 }
 0x10b   : > { %v1951_v58 = vadd.f32 %v1874_v53, %v1695_v3  ;;  %v1251_v2 = vadd.f32 %v1175_v12, %v4999_v51  ;;  %v5213_v11 = vpack.c.b16 %v1513_v0, %v1512_v6  ;;  %v1410_v51 = vrot.slane %v5142_v55, 5 }
 0x10c   : > { %v2154_v16 = vpop.f32.mrf.mxu0  ;;  %v5216_v3 = vpack.c.b16 %v1070_v46, %v1069_v61  ;;  %v909_v53 = vor.u32 %v908_v33, %v905_v32 }
 0x10d   : > { %v5208_v28 = vadd.f32 %v2152_v59, %v1951_v58  ;;  %v919_v59 = vor.u32 %v918_v43, %v914_v45  ;;  %v1412_v55 = vrot.slane %v1410_v51, 4  ;;  %v927_v43 = vshrl.u32 %v5238_v35, 16 }
 0x10f   : > { %5758 = vst [vmem:[#allocation31_spill] sm:$0xff] %v5208_v28  ;;  %v1414_v61 = vsel %vm4728_vm5, %v1412_v55, %v1413_v14 }
 0x110   : > { %v1620_v9 = vpop.f32.mrf.mxu2  ;;  %v1515_v55 = vunpack.c.l.b16 %v1414_v61 }
 0x111   : > { %v1696_v17 = vadd.f32 %v1620_v9, %v1251_v2  ;;  %v1876_v18 = vpop.f32.mrf.mxu3  ;;  %v3816_v9 = vrot.slane %v5134_v19, 9  ;;  %v4249_v19 = vld [vmem:[%s5709_s1 + $0x1c8] sm:$0xff]  ;;  %v5241_v2 = vld [vmem:[%s4545_s26 + $0xa0] sm:$0xf] }
 0x112   : > { %v1178_v42 = vpop.f32.mrf.mxu1  ;;  %2940 = vmatpush.bf16.msra.mxu3 %v4249_v19 }
 0x113   : > { %v1952_v56 = vadd.f32 %v1876_v18, %v1696_v17  ;;  %v1252_v60 = vadd.f32 %v1178_v42, %v5020_v44  ;;  %v910_v44 = vrot.slane %v909_v53, 4  ;;  %v920_v18 = vrot.slane %v919_v59, 4 }
 0x114   : > { %v2157_v12 = vpop.f32.mrf.mxu0  ;;  %v924_v17 = vrot.slane %v922_v34, 5  ;;  %v1411_v0 = vsel %vm4728_vm5, %v3816_v9, %v1410_v51  ;;  %v930_v42 = vshll.u32 %v5238_v35, 16  ;;  %v936_v51 = vshll.u32 %v5241_v2, 16 }
 0x115   : > { %1217 = vmatmul.bf16.gmra.mxu1 %v5175_v50  ;;  %1662 = vmatmul.bf16.gmra.mxu2 %v5213_v11  ;;  %v5224_v31 = vadd.f32 %v2154_v16, %v1952_v56  ;;  %v915_v32 = vsel %vm4723_vm4, %v910_v44, %v914_v45  ;;  %v940_v56 = vshrl.u32 %v5241_v2, 16  ;;  %v4233_v45 = vld [vmem:[%s5709_s1 + $0x148] sm:$0xff]  ;;  %v1514_v9 = vunpack.c.l.b16 %v1411_v0 }
 0x116   : > { %1918 = vmatmul.bf16.gmra.mxu3 %v5227_v47  ;;  %v925_v33 = vsel %vm4723_vm4, %v920_v18, %v924_v17  ;;  %2406 = vmatpush.bf16.msra.mxu1 %v4233_v45  ;;  %v929_v18 = vrot.slane %v927_v43, 4  ;;  %v932_v17 = vrot.slane %v930_v42, 5  ;;  %v938_v40 = vrot.slane %v936_v51, 5  ;;  %v5279_v45 = vld [vmem:[%s4545_s26 + $0xa8] sm:$0xf] }
 0x117   : > { %5759 = vst [vmem:[#allocation32_spill] sm:$0xff] %v5224_v31  ;;  %2196 = vmatmul.bf16.gmra.mxu0 %v5216_v3  ;;  %v1072_v44 = vunpack.c.l.b16 %v925_v33  ;;  %v942_v19 = vrot.slane %v940_v56, 4  ;;  %v5268_v0 = vpack.c.b16 %v1515_v55, %v1514_v9  ;;  %v3817_v51 = vrot.slane %v5190_v26, 9 }
 0x118   : > { %v1623_v58 = vpop.f32.mrf.mxu2  ;;  %v1420_v56 = vrot.slane %v5211_v25, 5 }
 0x119   : > { %v1697_v16 = vadd.f32 %v1623_v58, %v1252_v60  ;;  %v1879_v6 = vpop.f32.mrf.mxu3  ;;  %v4257_v60 = vld [vmem:[%s5709_s1 + $0x208] sm:$0xff] }
 0x11a   : > { %v1180_v46 = vpop.f32.mrf.mxu1  ;;  %3202 = vmatpush.bf16.msra.mxu0 %v4257_v60 }
 0x11b   : > { %v1953_v53 = vadd.f32 %v1879_v6, %v1697_v16  ;;  %v1253_v59 = vadd.f32 %v1180_v46, %v5058_v15  ;;  %v1071_v15 = vunpack.c.l.b16 %v915_v32  ;;  %v1417_v16 = vrot.slane %v5193_v22, 5  ;;  %v5266_v6 = vld [vmem:[%s4545_s26 + $0xa4] sm:$0x1] }
 0x11c   : > { %v2159_v34 = vpop.f32.mrf.mxu0  ;;  %v933_v32 = vor.u32 %v932_v17, %v929_v18  ;;  %v946_v22 = vshll.u32 %v5266_v6, 16 }
 0x11d   : > { %v5262_v14 = vadd.f32 %v2157_v12, %v1953_v53  ;;  %v5270_v12 = vpack.c.b16 %v1072_v44, %v1071_v15  ;;  %v943_v53 = vor.u32 %v942_v19, %v938_v40  ;;  %v1418_v15 = vsel %vm4728_vm5, %v3817_v51, %v1417_v16 }
 0x11e   : > { %v934_v26 = vrot.slane %v933_v32, 4  ;;  %v948_v55 = vrot.slane %v946_v22, 5  ;;  %v954_v19 = vshll.u32 %v5279_v45, 16 }
 0x11f   : > { %5760 = vst [vmem:[#allocation33_spill] sm:$0xff] %v5262_v14  ;;  %v944_v9 = vrot.slane %v943_v53, 4 }
 0x120   : > { %v1625_v58 = vpop.f32.mrf.mxu2 }
 0x121   : > { %v1698_v46 = vadd.f32 %v1625_v58, %v1253_v59  ;;  %v1881_v31 = vpop.f32.mrf.mxu3  ;;  %v1419_v59 = vrot.slane %v1417_v16, 4  ;;  %v939_v16 = vsel %vm4723_vm4, %v934_v26, %v938_v40  ;;  %v949_v22 = vsel %vm4723_vm4, %v944_v9, %v948_v55 }
 0x122   : > { %v1183_v61 = vpop.f32.mrf.mxu1  ;;  %v1074_v28 = vunpack.c.l.b16 %v949_v22  ;;  %v1424_v40 = vrot.slane %v5241_v2, 5  ;;  %v5334_v22 = vld [vmem:[%s4545_s26 + $0xb4] sm:$0xf] }
 0x123   : > { %v1954_v33 = vadd.f32 %v1881_v31, %v1698_v46  ;;  %v1254_v43 = vadd.f32 %v1183_v61, %v5081_v8  ;;  %v5284_v31 = vld [vmem:[%s4545_s26 + $0x90] sm:$0xff]  ;;  %v5289_v8 = vld [vmem:[%s4545_s26 + $0xac] sm:$0xf]  ;;  %v1421_v44 = vsel %vm4728_vm5, %v1419_v59, %v1420_v56  ;;  %v956_v56 = vrot.slane %v954_v19, 5 }
 0x124   : > { %v2162_v42 = vpop.f32.mrf.mxu0  ;;  %5762 = vst [vmem:[#allocation35_spill] sm:$0xff] %v5284_v31  ;;  %v960_v58 = vshll.u32 %v5289_v8, 16  ;;  %v964_v46 = vshrl.u32 %v5289_v8, 16  ;;  %v1517_v51 = vunpack.c.l.b16 %v1421_v44 }
 0x125   : > { %1222 = vmatmul.bf16.gmra.mxu1 %v5216_v3  ;;  %1667 = vmatmul.bf16.gmra.mxu2 %v5268_v0  ;;  %v5281_v60 = vadd.f32 %v2159_v34, %v1954_v33  ;;  %v951_v34 = vshrl.u32 %v5279_v45, 16 }
 0x126   : > { %1923 = vmatmul.bf16.gmra.mxu3 %v5284_v31  ;;  %v1073_v31 = vunpack.c.l.b16 %v939_v16 }
 0x127   : > { %5761 = vst [vmem:[#allocation34_spill] sm:$0xff] %v5281_v60  ;;  %2201 = vmatmul.bf16.gmra.mxu0 %v5270_v12  ;;  %v953_v59 = vrot.slane %v951_v34, 4  ;;  %v966_v60 = vrot.slane %v964_v46, 4  ;;  %v1426_v46 = vrot.slane %v1424_v40, 4 }
 0x128   : > { %v1628_v25 = vpop.f32.mrf.mxu2  ;;  %v5313_v34 = vpack.c.b16 %v1074_v28, %v1073_v31  ;;  %v5322_v28 = vld [vmem:[%s4545_s26 + $0x9c] sm:$0xff] }
 0x129   : > { %v1699_v18 = vadd.f32 %v1628_v25, %v1254_v43  ;;  %v1884_v17 = vpop.f32.mrf.mxu3  ;;  %v1516_v43 = vunpack.c.l.b16 %v1418_v15  ;;  %v962_v25 = vrot.slane %v960_v58, 5  ;;  %v957_v9 = vor.u32 %v956_v56, %v953_v59  ;;  %5765 = vst [vmem:[#allocation38_spill] sm:$0xff] %v5322_v28 }
 0x12a   : > { %v1185_v61 = vpop.f32.mrf.mxu1  ;;  %v3818_v58 = vrot.slane %v5238_v35, 9  ;;  %v4240_v35 = vld [vmem:[%s5709_s1 + $0x180] sm:$0xff] }
 0x12b   : > { %v1955_v32 = vadd.f32 %v1884_v17, %v1699_v18  ;;  %v1255_v33 = vadd.f32 %v1185_v61, %v5109_v5  ;;  %v5307_v18 = vld [vmem:[%s4545_s26 + $0xb0] sm:$0x1]  ;;  %v5309_v17 = vpack.c.b16 %v1517_v51, %v1516_v43  ;;  %v967_v55 = vor.u32 %v966_v60, %v962_v25  ;;  %2663 = vmatpush.bf16.msra.mxu2 %v4240_v35 }
 0x12c   : > { %v2164_v53 = vpop.f32.mrf.mxu0  ;;  %v970_v15 = vshll.u32 %v5307_v18, 16  ;;  %v958_v2 = vrot.slane %v957_v9, 4  ;;  %v1425_v51 = vsel %vm4728_vm5, %v3818_v58, %v1424_v40  ;;  %v975_v9 = vshrl.u32 %v5334_v22, 16  ;;  %v4232_v58 = vld [vmem:[%s5709_s1 + $0x140] sm:$0xff] }
 0x12d   : > { %v5304_v14 = vadd.f32 %v2162_v42, %v1955_v32  ;;  %v1427_v32 = vrot.slane %v5266_v6, 5  ;;  %v968_v60 = vrot.slane %v967_v55, 4  ;;  %v4248_v6 = vld [vmem:[%s5709_s1 + $0x1c0] sm:$0xff]  ;;  %v978_v55 = vshll.u32 %v5334_v22, 16  ;;  %2407 = vmatpush.bf16.msra.mxu1 %v4232_v58 }
 0x12e   : > { %2941 = vmatpush.bf16.msra.mxu3 %v4248_v6  ;;  %v977_v35 = vrot.slane %v975_v9, 4 }
 0x12f   : > { %5763 = vst [vmem:[#allocation36_spill] sm:$0xff] %v5304_v14  ;;  %v980_v6 = vrot.slane %v978_v55, 5 }
 0x130   : > { %v1630_v5 = vpop.f32.mrf.mxu2 }
 0x131   : > { %v1700_v26 = vadd.f32 %v1630_v5, %v1255_v33  ;;  %v1886_v61 = vpop.f32.mrf.mxu3  ;;  %v972_v33 = vrot.slane %v970_v15, 5  ;;  %v1428_v5 = vsel %vm4728_vm5, %v1426_v46, %v1427_v32  ;;  %v1518_v46 = vunpack.c.l.b16 %v1425_v51 }
 0x132   : > { %v1188_v44 = vpop.f32.mrf.mxu1  ;;  %v1519_v32 = vunpack.c.l.b16 %v1428_v5  ;;  %v1431_v5 = vrot.slane %v5289_v8, 5  ;;  %v5375_v8 = vld [vmem:[%s4545_s26 + $0xa8] sm:$0xff] }
 0x133   : > { %v1956_v42 = vadd.f32 %v1886_v61, %v1700_v26  ;;  %v1256_v31 = vadd.f32 %v1188_v44, %v4905_v23  ;;  %v963_v26 = vsel %vm4723_vm4, %v958_v2, %v962_v25  ;;  %v973_v23 = vsel %vm4723_vm4, %v968_v60, %v972_v33  ;;  %v4256_v25 = vld [vmem:[%s5709_s1 + $0x200] sm:$0xff] }
 0x134   : > { %v2167_v19 = vpop.f32.mrf.mxu0  ;;  %v1075_v2 = vunpack.c.l.b16 %v963_v26  ;;  %v1076_v60 = vunpack.c.l.b16 %v973_v23  ;;  %3203 = vmatpush.bf16.msra.mxu0 %v4256_v25  ;;  %v5363_v51 = vpack.c.b16 %v1519_v32, %v1518_v46  ;;  %v5382_v46 = vld [vmem:[%s4545_s26 + $0xc0] sm:$0xf] }
 0x135   : > { %1227 = vmatmul.bf16.gmra.mxu1 %v5270_v12  ;;  %1672 = vmatmul.bf16.gmra.mxu2 %v5309_v17  ;;  %v5319_v16 = vadd.f32 %v2164_v53, %v1956_v42  ;;  %v5337_v53 = vld [vmem:[%s4545_s26 + $0xb8] sm:$0xf]  ;;  %5767 = vst [vmem:[#allocation40_spill] sm:$0xff] %v5382_v46 }
 0x136   : > { %1928 = vmatmul.bf16.gmra.mxu3 %v5322_v28  ;;  %v984_v40 = vshll.u32 %v5337_v53, 16  ;;  %v988_v15 = vshrl.u32 %v5337_v53, 16  ;;  %v5366_v23 = vpack.c.b16 %v1076_v60, %v1075_v2 }
 0x137   : > { %5764 = vst [vmem:[#allocation37_spill] sm:$0xff] %v5319_v16  ;;  %2206 = vmatmul.bf16.gmra.mxu0 %v5313_v34 }
 0x138   : > { %v1633_v43 = vpop.f32.mrf.mxu2 }
 0x139   : > { %v1701_v59 = vadd.f32 %v1633_v43, %v1256_v31  ;;  %v1889_v56 = vpop.f32.mrf.mxu3  ;;  %v986_v31 = vrot.slane %v984_v40, 5  ;;  %v990_v43 = vrot.slane %v988_v15, 4 }
 0x13a   : > { %v1190_v61 = vpop.f32.mrf.mxu1 }
 0x13b   : > { %v1957_v44 = vadd.f32 %v1889_v56, %v1701_v59  ;;  %v1257_v59 = vadd.f32 %v1190_v61, %v4937_v39  ;;  %v5361_v56 = vld [vmem:[%s4545_s26 + $0xbc] sm:$0x1]  ;;  %v991_v9 = vor.u32 %v990_v43, %v986_v31  ;;  %v1433_v61 = vrot.slane %v1431_v5, 4 }
 0x13c   : > { %v2169_v42 = vpop.f32.mrf.mxu0  ;;  %v994_v55 = vshll.u32 %v5361_v56, 16  ;;  %v2014_v43 = vshrl.u32 %v5382_v46, 16 }
 0x13d   : > { %v5357_v33 = vadd.f32 %v2167_v19, %v1957_v44  ;;  %v981_v19 = vor.u32 %v980_v6, %v977_v35  ;;  %v1434_v44 = vrot.slane %v5307_v18, 5 }
 0x13e   : > { %v996_v58 = vrot.slane %v994_v55, 5 }
 0x13f   : > { %v1435_v6 = vsel %vm4728_vm5, %v1433_v61, %v1434_v44  ;;  %v2016_v44 = vrot.slane %v2014_v43, 4 }
 0x140   : > { %v1635_v16 = vpop.f32.mrf.mxu2 }
 0x141   : > { %v1702_v14 = vadd.f32 %v1635_v16, %v1257_v59  ;;  %v1891_v28 = vpop.f32.mrf.mxu3  ;;  %v3819_v16 = vrot.slane %v5279_v45, 9  ;;  %v5385_v45 = vld [vmem:[%s4545_s26 + $0xc4] sm:$0xf] }
 0x142   : > { %v1193_v26 = vpop.f32.mrf.mxu1 }
 0x143   : > { %v1958_v40 = vadd.f32 %v1891_v28, %v1702_v14  ;;  %v982_v14 = vrot.slane %v981_v19, 4  ;;  %v992_v28 = vrot.slane %v991_v9, 4  ;;  %v1258_v25 = vadd.f32 %v1193_v26, %v4966_v27 }
 0x144   : > { %v2172_v39 = vpop.f32.mrf.mxu0  ;;  %v1432_v60 = vsel %vm4728_vm5, %v3819_v16, %v1431_v5  ;;  %v2017_v19 = vshll.u32 %v5382_v46, 16  ;;  %v2023_v9 = vshll.u32 %v5385_v45, 16  ;;  %v2027_v5 = vshrl.u32 %v5385_v45, 16 }
 0x145   : > { %1232 = vmatmul.bf16.gmra.mxu1 %v5313_v34  ;;  %1677 = vmatmul.bf16.gmra.mxu2 %v5363_v51  ;;  %v5372_v15 = vadd.f32 %v2169_v42, %v1958_v40  ;;  %v987_v18 = vsel %vm4723_vm4, %v982_v14, %v986_v31  ;;  %v997_v27 = vsel %vm4723_vm4, %v992_v28, %v996_v58  ;;  %v1520_v55 = vunpack.c.l.b16 %v1432_v60 }
 0x146   : > { %1933 = vmatmul.bf16.gmra.mxu3 %v5375_v8  ;;  %v1521_v40 = vunpack.c.l.b16 %v1435_v6  ;;  %v1077_v61 = vunpack.c.l.b16 %v987_v18  ;;  %v1078_v31 = vunpack.c.l.b16 %v997_v27  ;;  %v2019_v28 = vrot.slane %v2017_v19, 5  ;;  %v5416_v19 = vld [vmem:[%s4545_s26 + $0xb4] sm:$0xff] }
 0x147   : > { %5766 = vst [vmem:[#allocation39_spill] sm:$0xff] %v5372_v15  ;;  %2211 = vmatmul.bf16.gmra.mxu0 %v5366_v23  ;;  %v2025_v58 = vrot.slane %v2023_v9, 5  ;;  %v1441_v9 = vrot.slane %v5361_v56, 5 }
 0x148   : > { %v1638_v32 = vpop.f32.mrf.mxu2  ;;  %v5405_v15 = vpack.c.b16 %v1521_v40, %v1520_v55  ;;  %v5407_v6 = vpack.c.b16 %v1078_v31, %v1077_v61  ;;  %v2020_v43 = vor.u32 %v2019_v28, %v2016_v44 }
 0x149   : > { %v1703_v42 = vadd.f32 %v1638_v32, %v1258_v25  ;;  %v1894_v2 = vpop.f32.mrf.mxu3  ;;  %v2029_v25 = vrot.slane %v2027_v5, 4 }
 0x14a   : > { %v1195_v35 = vpop.f32.mrf.mxu1  ;;  %v2021_v55 = vrot.slane %v2020_v43, 4 }
 0x14b   : > { %v1959_v59 = vadd.f32 %v1894_v2, %v1703_v42  ;;  %v1259_v14 = vadd.f32 %v1195_v35, %v4997_v1  ;;  %v5403_v42 = vld [vmem:[%s4545_s26 + $0xc8] sm:$0x1]  ;;  %v2030_v1 = vor.u32 %v2029_v25, %v2025_v58 }
 0x14c   : > { %v2174_v26 = vpop.f32.mrf.mxu0  ;;  %v2033_v35 = vshll.u32 %v5403_v42, 16  ;;  %v2026_v56 = vsel %vm4723_vm4, %v2021_v55, %v2025_v58 }
 0x14d   : > { %v5399_v16 = vadd.f32 %v2172_v39, %v1959_v59  ;;  %v1438_v39 = vrot.slane %v5337_v53, 5  ;;  %v3820_v53 = vrot.slane %v5334_v22, 9  ;;  %v2031_v40 = vrot.slane %v2030_v1, 4 }
 0x14e   : > { %v2035_v61 = vrot.slane %v2033_v35, 5  ;;  %v2086_v43 = vunpack.c.l.b16 %v2026_v56 }
 0x14f   : > { %v1439_v28 = vsel %vm4728_vm5, %v3820_v53, %v1438_v39 }
 0x150   : > { %v1640_v32 = vpop.f32.mrf.mxu2 }
 0x151   : > { %v1704_v2 = vadd.f32 %v1640_v32, %v1259_v14  ;;  %v1896_v46 = vpop.f32.mrf.mxu3 }
 0x152   : > { %v1198_v60 = vpop.f32.mrf.mxu1 }
 0x153   : > { %v1960_v18 = vadd.f32 %v1896_v46, %v1704_v2  ;;  %v1440_v46 = vrot.slane %v1438_v39, 4  ;;  %v1260_v5 = vadd.f32 %v1198_v60, %v5016_v13  ;;  %v2036_v13 = vsel %vm4723_vm4, %v2031_v40, %v2035_v61 }
 0x154   : > { %v2177_v27 = vpop.f32.mrf.mxu0  ;;  %v1522_v2 = vunpack.c.l.b16 %v1439_v28  ;;  %v2087_v1 = vunpack.c.l.b16 %v2036_v13 }
 0x155   : > { %1237 = vmatmul.bf16.gmra.mxu1 %v5366_v23  ;;  %1682 = vmatmul.bf16.gmra.mxu2 %v5405_v15  ;;  %v5413_v59 = vadd.f32 %v2174_v26, %v1960_v18  ;;  %v1442_v25 = vsel %vm4728_vm5, %v1440_v46, %v1441_v9 }
 0x156   : > { %1938 = vmatmul.bf16.gmra.mxu3 %v5416_v19  ;;  %v1523_v60 = vunpack.c.l.b16 %v1442_v25  ;;  %v5439_v58 = vpack.c.b16 %v2087_v1, %v2086_v43 }
 0x157   : > { %2216 = vmatmul.bf16.gmra.mxu0 %v5407_v6 }
 0x158   : > { %v1643_v31 = vpop.f32.mrf.mxu2  ;;  %v5434_v9 = vpack.c.b16 %v1523_v60, %v1522_v2 }
 0x159   : > { %v1705_v44 = vadd.f32 %v1643_v31, %v1260_v5  ;;  %v1899_v26 = vpop.f32.mrf.mxu3  ;;  %v5437_v31 = vld [vmem:[%s4545_s26 + $0xc0] sm:$0xff] }
 0x15a   : > { %v1200_v14 = vpop.f32.mrf.mxu1 }
 0x15b   : > { %v1961_v22 = vadd.f32 %v1899_v26, %v1705_v44  ;;  %v1261_v39 = vadd.f32 %v1200_v14, %v5052_v7 }
 0x15c   : > { %v2179_v32 = vpop.f32.mrf.mxu0 }
 0x15d   : > { %v5431_v18 = vadd.f32 %v2177_v27, %v1961_v22 }
 0x160   : > { %v1645_v35 = vpop.f32.mrf.mxu2 }
 0x161   : > { %v1706_v53 = vadd.f32 %v1645_v35, %v1261_v39  ;;  %v1901_v46 = vpop.f32.mrf.mxu3 }
 0x162   : > { %v1203_v5 = vpop.f32.mrf.mxu1 }
 0x163   : > { %v1962_v55 = vadd.f32 %v1901_v46, %v1706_v53  ;;  %v1262_v7 = vadd.f32 %v1203_v5, %v5076_v20  ;;  %v4342_v20 = vld [vmem:[%s4545_s26 + $0x18] sm:$0xff] }
 0x164   : > { %v2182_v40 = vpop.f32.mrf.mxu0 }
 0x165   : > { %1242 = vmatmul.bf16.gmra.mxu1 %v5407_v6  ;;  %1687 = vmatmul.bf16.gmra.mxu2 %v5434_v9  ;;  %v5443_v27 = vadd.f32 %v2179_v32, %v1962_v55 }
 0x166   : > { %1943 = vmatmul.bf16.gmra.mxu3 %v5437_v31 }
 0x167   : > { %2221 = vmatmul.bf16.gmra.mxu0 %v5439_v58 }
 0x168   : > { %v1648_v61 = vpop.f32.mrf.mxu2 }
 0x169   : > { %v1707_v44 = vadd.f32 %v1648_v61, %v1262_v7  ;;  %v1904_v26 = vpop.f32.mrf.mxu3 }
 0x16a   : > { %v1205_v14 = vpop.f32.mrf.mxu1 }
 0x16b   : > { %v1963_v28 = vadd.f32 %v1904_v26, %v1707_v44  ;;  %v1263_v56 = vadd.f32 %v1205_v14, %v5099_v30 }
 0x16c   : > { %v2184_v25 = vpop.f32.mrf.mxu0 }
 0x16d   : > { %v5448_v22 = vadd.f32 %v2182_v40, %v1963_v28 }
 0x170   : > { %v1650_v13 = vpop.f32.mrf.mxu2 }
 0x171   : > { %v1708_v32 = vadd.f32 %v1650_v13, %v1263_v56  ;;  %v1906_v2 = vpop.f32.mrf.mxu3 }
 0x172   : > { %v1208_v60 = vpop.f32.mrf.mxu1 }
 0x173   : > { %v1964_v43 = vadd.f32 %v1906_v2, %v1708_v32  ;;  %v1264_v35 = vadd.f32 %v1208_v60, %v4924_v57  ;;  %v4343_v57 = vld [vmem:[%s4545_s26 + $0x24] sm:$0xff] }
 0x174   : > { %v2187_v1 = vpop.f32.mrf.mxu0 }
 0x175   : > { %2408 = vmatmul.bf16.vlgmr.msra.gmra.mxu1 %v4794_v49  ;;  %2664 = vmatmul.bf16.vlgmr.msra.gmra.mxu2 %v4342_v20  ;;  %v5453_v39 = vadd.f32 %v2184_v25, %v1964_v43 }
 0x176   : > { %2942 = vmatmul.bf16.vlgmr.msra.gmra.mxu3 %v4797_v52 }
 0x177   : > { %3204 = vmatmul.bf16.vlgmr.msra.gmra.mxu0 %v4826_v63 }
 0x178   : > { %v1653_v30 = vpop.f32.mrf.mxu2 }
 0x179   : > { %v1709_v53 = vadd.f32 %v1653_v30, %v1264_v35  ;;  %v1909_v46 = vpop.f32.mrf.mxu3 }
 0x17a   : > { %v1210_v5 = vpop.f32.mrf.mxu1 }
 0x17b   : > { %v1965_v55 = vadd.f32 %v1909_v46, %v1709_v53  ;;  %v1265_v49 = vadd.f32 %v1210_v5, %v4956_v62 }
 0x17c   : > { %v2189_v40 = vpop.f32.mrf.mxu0 }
 0x17d   : > { %v5458_v7 = vadd.f32 %v2187_v1, %v1965_v55 }
 0x180   : > { %v1655_v61 = vpop.f32.mrf.mxu2 }
 0x181   : > { %v1710_v44 = vadd.f32 %v1655_v61, %v1265_v49  ;;  %v1911_v26 = vpop.f32.mrf.mxu3 }
 0x182   : > { %v1213_v14 = vpop.f32.mrf.mxu1 }
 0x183   : > { %v1966_v52 = vadd.f32 %v1911_v26, %v1710_v44  ;;  %v1266_v56 = vadd.f32 %v1213_v14, %v4985_v54  ;;  %v4344_v54 = vld [vmem:[%s4545_s26 + $0x30] sm:$0xff] }
 0x184   : > { %v2192_v28 = vpop.f32.mrf.mxu0 }
 0x185   : > { %2413 = vmatmul.bf16.gmra.mxu1 %v4826_v63  ;;  %2669 = vmatmul.bf16.gmra.mxu2 %v4343_v57  ;;  %v5463_v25 = vadd.f32 %v2189_v40, %v1966_v52 }
 0x186   : > { %2947 = vmatmul.bf16.gmra.mxu3 %v4828_v21 }
 0x187   : > { %3209 = vmatmul.bf16.gmra.mxu0 %v4870_v38 }
 0x188   : > { %v1658_v62 = vpop.f32.mrf.mxu2 }
 0x189   : > { %v1711_v13 = vadd.f32 %v1658_v62, %v1266_v56  ;;  %v1914_v32 = vpop.f32.mrf.mxu3 }
 0x18a   : > { %v1215_v2 = vpop.f32.mrf.mxu1 }
 0x18b   : > { %v1967_v60 = vadd.f32 %v1914_v32, %v1711_v13  ;;  %v1267_v63 = vadd.f32 %v1215_v2, %v5008_v10  ;;  %v5768_v32 = vld [vmem:[#allocation11_spill] sm:$0xff]  ;;  %v5769_v2 = vld [vmem:[#allocation21_spill] sm:$0xff] }
 0x18c   : > { %v2194_v43 = vpop.f32.mrf.mxu0 }
 0x18d   : > { %v5468_v1 = vadd.f32 %v2192_v28, %v1967_v60 }
 0x190   : > { %v1660_v20 = vpop.f32.mrf.mxu2 }
 0x191   : > { %v1712_v35 = vadd.f32 %v1660_v20, %v1267_v63  ;;  %v1916_v30 = vpop.f32.mrf.mxu3 }
 0x192   : > { %v1218_v53 = vpop.f32.mrf.mxu1 }
 0x193   : > { %v1968_v21 = vadd.f32 %v1916_v30, %v1712_v35  ;;  %v1268_v55 = vadd.f32 %v1218_v53, %v5040_v24  ;;  %v4345_v24 = vld [vmem:[%s4545_s26 + $0x3c] sm:$0xff] }
 0x194   : > { %v2197_v46 = vpop.f32.mrf.mxu0 }
 0x195   : > { %2418 = vmatmul.bf16.gmra.mxu1 %v4870_v38  ;;  %2674 = vmatmul.bf16.gmra.mxu2 %v4344_v54  ;;  %v5473_v5 = vadd.f32 %v2194_v43, %v1968_v21 }
 0x196   : > { %2952 = vmatmul.bf16.gmra.mxu3 %v4873_v4 }
 0x197   : > { %3214 = vmatmul.bf16.gmra.mxu0 %v4902_v36 }
 0x198   : > { %v1663_v10 = vpop.f32.mrf.mxu2 }
 0x199   : > { %v1713_v40 = vadd.f32 %v1663_v10, %v1268_v55  ;;  %v1919_v49 = vpop.f32.mrf.mxu3 }
 0x19a   : > { %v1220_v61 = vpop.f32.mrf.mxu1 }
 0x19b   : > { %v1969_v44 = vadd.f32 %v1919_v49, %v1713_v40  ;;  %v1269_v38 = vadd.f32 %v1220_v61, %v5069_v48  ;;  %v4346_v49 = vld [vmem:[%s4545_s26 + $0x48] sm:$0xff] }
 0x19c   : > { %v2199_v26 = vpop.f32.mrf.mxu0 }
 0x19d   : > { %v5478_v14 = vadd.f32 %v2197_v46, %v1969_v44  ;;  %v5771_v44 = vld [vmem:[#allocation12_spill] sm:$0xff] }
 0x1a0   : > { %v1665_v52 = vpop.f32.mrf.mxu2 }
 0x1a1   : > { %v1714_v28 = vadd.f32 %v1665_v52, %v1269_v38  ;;  %v1921_v57 = vpop.f32.mrf.mxu3  ;;  %v5773_v38 = vld [vmem:[#allocation9_spill] sm:$0xff] }
 0x1a2   : > { %v1223_v56 = vpop.f32.mrf.mxu1 }
 0x1a3   : > { %v1970_v4 = vadd.f32 %v1921_v57, %v1714_v28  ;;  %v1270_v60 = vadd.f32 %v1223_v56, %v5769_v2 }
 0x1a4   : > { %v2202_v62 = vpop.f32.mrf.mxu0 }
 0x1a5   : > { %2423 = vmatmul.bf16.gmra.mxu1 %v4902_v36  ;;  %2679 = vmatmul.bf16.gmra.mxu2 %v4345_v24  ;;  %v5483_v13 = vadd.f32 %v2199_v26, %v1970_v4  ;;  %v5770_v36 = vld [vmem:[#allocation23_spill] sm:$0xff] }
 0x1a6   : > { %2957 = vmatmul.bf16.gmra.mxu3 %v4907_v41  ;;  %v5772_v26 = vld [vmem:[#allocation15_spill] sm:$0xff] }
 0x1a7   : > { %3219 = vmatmul.bf16.gmra.mxu0 %v5768_v32 }
 0x1a8   : > { %v1668_v48 = vpop.f32.mrf.mxu2 }
 0x1a9   : > { %v1715_v43 = vadd.f32 %v1668_v48, %v1270_v60  ;;  %v1924_v63 = vpop.f32.mrf.mxu3 }
 0x1aa   : > { %v1225_v20 = vpop.f32.mrf.mxu1 }
 0x1ab   : > { %v1971_v35 = vadd.f32 %v1924_v63, %v1715_v43  ;;  %v1271_v21 = vadd.f32 %v1225_v20, %v5770_v36  ;;  %v4347_v36 = vld [vmem:[%s4545_s26 + $0x54] sm:$0xff] }
 0x1ac   : > { %v2204_v30 = vpop.f32.mrf.mxu0 }
 0x1ad   : > { %v5488_v53 = vadd.f32 %v2202_v62, %v1971_v35 }
 0x1b0   : > { %v1670_v46 = vpop.f32.mrf.mxu2 }
 0x1b1   : > { %v1716_v54 = vadd.f32 %v1670_v46, %v1271_v21  ;;  %v1926_v55 = vpop.f32.mrf.mxu3  ;;  %v5775_v46 = vld [vmem:[#allocation16_spill] sm:$0xff] }
 0x1b2   : > { %v1228_v10 = vpop.f32.mrf.mxu1 }
 0x1b3   : > { %v1972_v41 = vadd.f32 %v1926_v55, %v1716_v54  ;;  %v1272_v52 = vadd.f32 %v1228_v10, %v5773_v38  ;;  %v5776_v54 = vld [vmem:[#allocation19_spill] sm:$0xff]  ;;  %v5777_v55 = vld [vmem:[#allocation13_spill] sm:$0xff] }
 0x1b4   : > { %v2207_v40 = vpop.f32.mrf.mxu0 }
 0x1b5   : > { %2428 = vmatmul.bf16.gmra.mxu1 %v5768_v32  ;;  %2684 = vmatmul.bf16.gmra.mxu2 %v4346_v49  ;;  %v5493_v61 = vadd.f32 %v2204_v30, %v1972_v41  ;;  %v5774_v32 = vld [vmem:[#allocation10_spill] sm:$0xff] }
 0x1b6   : > { %2962 = vmatmul.bf16.gmra.mxu3 %v5771_v44 }
 0x1b7   : > { %3224 = vmatmul.bf16.gmra.mxu0 %v5772_v26 }
 0x1b8   : > { %v1673_v28 = vpop.f32.mrf.mxu2 }
 0x1b9   : > { %v1717_v57 = vadd.f32 %v1673_v28, %v1272_v52  ;;  %v1929_v56 = vpop.f32.mrf.mxu3 }
 0x1ba   : > { %v1230_v4 = vpop.f32.mrf.mxu1 }
 0x1bb   : > { %v1973_v62 = vadd.f32 %v1929_v56, %v1717_v57  ;;  %v1273_v60 = vadd.f32 %v1230_v4, %v5774_v32 }
 0x1bc   : > { %v2209_v24 = vpop.f32.mrf.mxu0 }
 0x1bd   : > { %v5498_v2 = vadd.f32 %v2207_v40, %v1973_v62 }
 0x1c0   : > { %v1675_v48 = vpop.f32.mrf.mxu2 }
 0x1c1   : > { %v1718_v43 = vadd.f32 %v1675_v48, %v1273_v60  ;;  %v1931_v63 = vpop.f32.mrf.mxu3  ;;  %v4348_v48 = vld [vmem:[%s4545_s26 + $0x60] sm:$0xff] }
 0x1c2   : > { %v1233_v20 = vpop.f32.mrf.mxu1 }
 0x1c3   : > { %v1974_v35 = vadd.f32 %v1931_v63, %v1718_v43  ;;  %v1274_v10 = vadd.f32 %v1233_v20, %v5777_v55  ;;  %v5779_v63 = vld [vmem:[#allocation20_spill] sm:$0xff]  ;;  %v5780_v20 = vld [vmem:[#allocation25_spill] sm:$0xff] }
 0x1c4   : > { %v2212_v30 = vpop.f32.mrf.mxu0 }
 0x1c5   : > { %2433 = vmatmul.bf16.gmra.mxu1 %v5772_v26  ;;  %2689 = vmatmul.bf16.gmra.mxu2 %v4347_v36  ;;  %v5503_v21 = vadd.f32 %v2209_v24, %v1974_v35  ;;  %v5778_v26 = vld [vmem:[#allocation14_spill] sm:$0xff]  ;;  %v5781_v35 = vld [vmem:[#allocation17_spill] sm:$0xff] }
 0x1c6   : > { %2967 = vmatmul.bf16.gmra.mxu3 %v5775_v46 }
 0x1c7   : > { %3229 = vmatmul.bf16.gmra.mxu0 %v5776_v54 }
 0x1c8   : > { %v1678_v41 = vpop.f32.mrf.mxu2 }
 0x1c9   : > { %v1719_v40 = vadd.f32 %v1678_v41, %v1274_v10  ;;  %v1934_v49 = vpop.f32.mrf.mxu3 }
 0x1ca   : > { %v1235_v44 = vpop.f32.mrf.mxu1 }
 0x1cb   : > { %v1975_v38 = vadd.f32 %v1934_v49, %v1719_v40  ;;  %v1275_v57 = vadd.f32 %v1235_v44, %v5778_v26 }
 0x1cc   : > { %v2214_v52 = vpop.f32.mrf.mxu0 }
 0x1cd   : > { %v5508_v28 = vadd.f32 %v2212_v30, %v1975_v38 }
 0x1d0   : > { %v1680_v56 = vpop.f32.mrf.mxu2 }
 0x1d1   : > { %v1720_v4 = vadd.f32 %v1680_v56, %v1275_v57  ;;  %v1936_v62 = vpop.f32.mrf.mxu3 }
 0x1d2   : > { %v1238_v24 = vpop.f32.mrf.mxu1 }
 0x1d3   : > { %v1976_v32 = vadd.f32 %v1936_v62, %v1720_v4  ;;  %v1276_v30 = vadd.f32 %v1238_v24, %v5781_v35  ;;  %v4349_v62 = vld [vmem:[%s4545_s26 + $0x6c] sm:$0xff] }
 0x1d4   : > { %v2217_v60 = vpop.f32.mrf.mxu0 }
 0x1d5   : > { %2438 = vmatmul.bf16.gmra.mxu1 %v5776_v54  ;;  %2694 = vmatmul.bf16.gmra.mxu2 %v4348_v48  ;;  %v5513_v43 = vadd.f32 %v2214_v52, %v1976_v32  ;;  %v5782_v54 = vld [vmem:[#allocation18_spill] sm:$0xff]  ;;  %v5784_v48 = vld [vmem:[#allocation28_spill] sm:$0xff] }
 0x1d6   : > { %2972 = vmatmul.bf16.gmra.mxu3 %v5779_v63  ;;  %v5783_v32 = vld [vmem:[#allocation26_spill] sm:$0xff] }
 0x1d7   : > { %3234 = vmatmul.bf16.gmra.mxu0 %v5780_v20 }
 0x1d8   : > { %v1683_v36 = vpop.f32.mrf.mxu2 }
 0x1d9   : > { %v1721_v46 = vadd.f32 %v1683_v36, %v1276_v30  ;;  %v1939_v55 = vpop.f32.mrf.mxu3 }
 0x1da   : > { %v1240_v10 = vpop.f32.mrf.mxu1 }
 0x1db   : > { %v1977_v41 = vadd.f32 %v1939_v55, %v1721_v46  ;;  %v1277_v44 = vadd.f32 %v1240_v10, %v5782_v54 }
 0x1dc   : > { %v2219_v40 = vpop.f32.mrf.mxu0 }
 0x1dd   : > { %v5518_v49 = vadd.f32 %v2217_v60, %v1977_v41  ;;  %v5785_v60 = vld [vmem:[#allocation22_spill] sm:$0xff] }
 0x1e0   : > { %v1685_v38 = vpop.f32.mrf.mxu2 }
 0x1e1   : > { %v1722_v52 = vadd.f32 %v1685_v38, %v1277_v44  ;;  %v1941_v26 = vpop.f32.mrf.mxu3 }
 0x1e2   : > { %v1243_v57 = vpop.f32.mrf.mxu1 }
 0x1e3   : > { %v1978_v56 = vadd.f32 %v1941_v26, %v1722_v52  ;;  %v1278_v63 = vadd.f32 %v1243_v57, %v5785_v60  ;;  %v5787_v57 = vld [vmem:[#allocation30_spill] sm:$0xff] }
 0x1e4   : > { %v2222_v4 = vpop.f32.mrf.mxu0 }
 0x1e5   : > { %2443 = vmatmul.bf16.gmra.mxu1 %v5780_v20  ;;  %2699 = vmatmul.bf16.gmra.mxu2 %v4349_v62  ;;  %v5523_v24 = vadd.f32 %v2219_v40, %v1978_v56  ;;  %v5786_v20 = vld [vmem:[#allocation24_spill] sm:$0xff] }
 0x1e6   : > { %2977 = vmatmul.bf16.gmra.mxu3 %v5783_v32 }
 0x1e7   : > { %3239 = vmatmul.bf16.gmra.mxu0 %v5784_v48 }
 0x1e8   : > { %v1688_v35 = vpop.f32.mrf.mxu2 }
 0x1e9   : > { %v1723_v30 = vadd.f32 %v1688_v35, %v1278_v63  ;;  %v1944_v36 = vpop.f32.mrf.mxu3 }
 0x1ea   : > { %v1245_v46 = vpop.f32.mrf.mxu1 }
 0x1eb   : > { %v1979_v55 = vadd.f32 %v1944_v36, %v1723_v30  ;;  %v1279_v54 = vadd.f32 %v1245_v46, %v5786_v20 }
 0x1ec   : > { %v2224_v10 = vpop.f32.mrf.mxu0 }
 0x1ed   : > { %v5528_v41 = vadd.f32 %v2222_v4, %v1979_v55  ;;  %v5788_v4 = vld [vmem:[#allocation27_spill] sm:$0xff] }
 0x1f0   : > { %v1690_v44 = vpop.f32.mrf.mxu2 }
 0x1f1   : > { %v1724_v40 = vadd.f32 %v1690_v44, %v1279_v54  ;;  %v1946_v38 = vpop.f32.mrf.mxu3 }
 0x1f2   : > { %v2409_v52 = vpop.f32.mrf.mxu1 }
 0x1f3   : > { %v1980_v26 = vadd.f32 %v1946_v38, %v1724_v40  ;;  %v2489_v32 = vadd.f32 %v2409_v52, %v5788_v4  ;;  %v5790_v4 = vld [vmem:[#allocation31_spill] sm:$0xff] }
 0x1f4   : > { %v3205_v56 = vpop.f32.mrf.mxu0 }
 0x1f5   : > { %2448 = vmatmul.bf16.gmra.mxu1 %v5784_v48  ;;  %2704 = vmatmul.bf16.gmra.mxu2 %v5787_v57  ;;  %v5533_v62 = vadd.f32 %v2224_v10, %v1980_v26 }
 0x1f6   : > { %2982 = vmatmul.bf16.gmra.mxu3 %v5175_v50  ;;  %v5789_v50 = vld [vmem:[#allocation29_spill] sm:$0xff] }
 0x1f7   : > { %3244 = vmatmul.bf16.gmra.mxu0 %v5213_v11 }
 0x1f8   : > { %v2665_v60 = vpop.f32.mrf.mxu2 }
 0x1f9   : > { %v2745_v63 = vadd.f32 %v2665_v60, %v2489_v32  ;;  %v2943_v35 = vpop.f32.mrf.mxu3 }
 0x1fa   : > { %v2411_v30 = vpop.f32.mrf.mxu1 }
 0x1fb   : > { %v3023_v36 = vadd.f32 %v2943_v35, %v2745_v63  ;;  %v2490_v55 = vadd.f32 %v2411_v30, %v5789_v50 }
 0x1fc   : > { %v3207_v48 = vpop.f32.mrf.mxu0 }
 0x1fd   : > { %v3285_v46 = vadd.f32 %v3205_v56, %v3023_v36 }
 0x1ff   : > { %3492 = vst [vmem:[%s5542_s11] sm:$0xff] %v3285_v46  ;;  %v3418_v26 = vmul.f32 %v3285_v46, %v3285_v46 }
 0x200   : > { %v2667_v10 = vpop.f32.mrf.mxu2 }
 0x201   : > { %v2746_v20 = vadd.f32 %v2667_v10, %v2490_v55  ;;  %v2945_v54 = vpop.f32.mrf.mxu3 }
 0x202   : > { %v2414_v44 = vpop.f32.mrf.mxu1 }
 0x203   : > { %v3024_v40 = vadd.f32 %v2945_v54, %v2746_v20  ;;  %v2491_v32 = vadd.f32 %v2414_v44, %v5790_v4 }
 0x204   : > { %v3210_v38 = vpop.f32.mrf.mxu0 }
 0x205   : > { %v3286_v52 = vadd.f32 %v3207_v48, %v3024_v40  ;;  %2453 = vmatmul.bf16.gmra.mxu1 %v5213_v11  ;;  %2709 = vmatmul.bf16.gmra.mxu2 %v5227_v47 }
 0x206   : > { %2987 = vmatmul.bf16.gmra.mxu3 %v5216_v3  ;;  %v5791_v3 = vld [vmem:[#allocation32_spill] sm:$0xff] }
 0x207   : > { %3249 = vmatmul.bf16.gmra.mxu0 %v5268_v0  ;;  %v3381_v56 = vadd.f32 %v3286_v52, %v3285_v46  ;;  %v3419_v57 = vmul.f32 %v3286_v52, %v3286_v52  ;;  %3493 = vst [vmem:[%s5542_s11 + $0x8] sm:$0xff] %v3286_v52 }
 0x208   : > { %v2670_v60 = vpop.f32.mrf.mxu2 }
 0x209   : > { %v3450_v63 = vadd.f32 %v3419_v57, %v3418_v26  ;;  %v2747_v35 = vadd.f32 %v2670_v60, %v2491_v32  ;;  %v2948_v30 = vpop.f32.mrf.mxu3  ;;  %v5792_v57 = vld [vmem:[#allocation35_spill] sm:$0xff]  ;;  %v5793_v32 = vld [vmem:[#allocation33_spill] sm:$0xff] }
 0x20a   : > { %v2416_v36 = vpop.f32.mrf.mxu1 }
 0x20b   : > { %v3025_v48 = vadd.f32 %v2948_v30, %v2747_v35  ;;  %v2492_v10 = vadd.f32 %v2416_v36, %v5791_v3 }
 0x20c   : > { %v3212_v11 = vpop.f32.mrf.mxu0 }
 0x20d   : > { %v3287_v50 = vadd.f32 %v3210_v38, %v3025_v48 }
 0x20f   : > { %v3382_v47 = vadd.f32 %v3381_v56, %v3287_v50  ;;  %v3420_v55 = vmul.f32 %v3287_v50, %v3287_v50  ;;  %3494 = vst [vmem:[%s5542_s11 + $0x10] sm:$0xff] %v3287_v50 }
 0x210   : > { %v2672_v20 = vpop.f32.mrf.mxu2 }
 0x211   : > { %v3451_v46 = vadd.f32 %v3450_v63, %v3420_v55  ;;  %v2748_v54 = vadd.f32 %v2672_v20, %v2492_v10  ;;  %v2950_v40 = vpop.f32.mrf.mxu3 }
 0x212   : > { %v2419_v52 = vpop.f32.mrf.mxu1 }
 0x213   : > { %v3026_v44 = vadd.f32 %v2950_v40, %v2748_v54  ;;  %v2493_v60 = vadd.f32 %v2419_v52, %v5793_v32 }
 0x214   : > { %v3215_v4 = vpop.f32.mrf.mxu0 }
 0x215   : > { %v3288_v26 = vadd.f32 %v3212_v11, %v3026_v44  ;;  %2458 = vmatmul.bf16.gmra.mxu1 %v5268_v0  ;;  %2714 = vmatmul.bf16.gmra.mxu2 %v5792_v57  ;;  %v5795_v57 = vld [vmem:[#allocation38_spill] sm:$0xff] }
 0x216   : > { %2992 = vmatmul.bf16.gmra.mxu3 %v5270_v12  ;;  %v5794_v12 = vld [vmem:[#allocation34_spill] sm:$0xff] }
 0x217   : > { %3254 = vmatmul.bf16.gmra.mxu0 %v5309_v17  ;;  %v3383_v38 = vadd.f32 %v3382_v47, %v3288_v26  ;;  %v3421_v56 = vmul.f32 %v3288_v26, %v3288_v26  ;;  %3495 = vst [vmem:[%s5542_s11 + $0x18] sm:$0xff] %v3288_v26 }
 0x218   : > { %v2675_v63 = vpop.f32.mrf.mxu2 }
 0x219   : > { %v3452_v35 = vadd.f32 %v3451_v46, %v3421_v56  ;;  %v2749_v30 = vadd.f32 %v2675_v63, %v2493_v60  ;;  %v2953_v36 = vpop.f32.mrf.mxu3  ;;  %v5796_v56 = vld [vmem:[#allocation36_spill] sm:$0xff] }
 0x21a   : > { %v2421_v48 = vpop.f32.mrf.mxu1 }
 0x21b   : > { %v3027_v11 = vadd.f32 %v2953_v36, %v2749_v30  ;;  %v2494_v10 = vadd.f32 %v2421_v48, %v5794_v12 }
 0x21c   : > { %v3217_v50 = vpop.f32.mrf.mxu0 }
 0x21d   : > { %v3289_v0 = vadd.f32 %v3215_v4, %v3027_v11 }
 0x21f   : > { %v3384_v55 = vadd.f32 %v3383_v38, %v3289_v0  ;;  %v3422_v3 = vmul.f32 %v3289_v0, %v3289_v0  ;;  %3496 = vst [vmem:[%s5542_s11 + $0x20] sm:$0xff] %v3289_v0 }
 0x220   : > { %v2677_v20 = vpop.f32.mrf.mxu2 }
 0x221   : > { %v3453_v47 = vadd.f32 %v3452_v35, %v3422_v3  ;;  %v2750_v54 = vadd.f32 %v2677_v20, %v2494_v10  ;;  %v2955_v40 = vpop.f32.mrf.mxu3 }
 0x222   : > { %v2424_v44 = vpop.f32.mrf.mxu1 }
 0x223   : > { %v3028_v52 = vadd.f32 %v2955_v40, %v2750_v54  ;;  %v2495_v32 = vadd.f32 %v2424_v44, %v5796_v56 }
 0x224   : > { %v3220_v26 = vpop.f32.mrf.mxu0 }
 0x225   : > { %v3290_v46 = vadd.f32 %v3217_v50, %v3028_v52  ;;  %2463 = vmatmul.bf16.gmra.mxu1 %v5309_v17  ;;  %2719 = vmatmul.bf16.gmra.mxu2 %v5795_v57 }
 0x226   : > { %2997 = vmatmul.bf16.gmra.mxu3 %v5313_v34  ;;  %v5797_v34 = vld [vmem:[#allocation37_spill] sm:$0xff] }
 0x227   : > { %3259 = vmatmul.bf16.gmra.mxu0 %v5363_v51  ;;  %v3385_v4 = vadd.f32 %v3384_v55, %v3290_v46  ;;  %v3423_v38 = vmul.f32 %v3290_v46, %v3290_v46  ;;  %3497 = vst [vmem:[%s5542_s11 + $0x28] sm:$0xff] %v3290_v46 }
 0x228   : > { %v2680_v60 = vpop.f32.mrf.mxu2 }
 0x229   : > { %v3454_v63 = vadd.f32 %v3453_v47, %v3423_v38  ;;  %v2751_v35 = vadd.f32 %v2680_v60, %v2495_v32  ;;  %v2958_v30 = vpop.f32.mrf.mxu3 }
 0x22a   : > { %v2426_v36 = vpop.f32.mrf.mxu1 }
 0x22b   : > { %v3029_v48 = vadd.f32 %v2958_v30, %v2751_v35  ;;  %v2496_v3 = vadd.f32 %v2426_v36, %v5797_v34 }
 0x22c   : > { %v3222_v11 = vpop.f32.mrf.mxu0 }
 0x22d   : > { %v3291_v17 = vadd.f32 %v3220_v26, %v3029_v48 }
 0x22f   : > { %v3386_v50 = vadd.f32 %v3385_v4, %v3291_v17  ;;  %v3424_v0 = vmul.f32 %v3291_v17, %v3291_v17  ;;  %3498 = vst [vmem:[%s5542_s11 + $0x30] sm:$0xff] %v3291_v17 }
 0x230   : > { %v2682_v12 = vpop.f32.mrf.mxu2 }
 0x231   : > { %v3455_v55 = vadd.f32 %v3454_v63, %v3424_v0  ;;  %v2752_v10 = vadd.f32 %v2682_v12, %v2496_v3  ;;  %v2960_v20 = vpop.f32.mrf.mxu3  ;;  %v5799_v12 = vld [vmem:[#allocation40_spill] sm:$0xff] }
 0x232   : > { %v2429_v54 = vpop.f32.mrf.mxu1 }
 0x233   : > { %v3030_v40 = vadd.f32 %v2960_v20, %v2752_v10  ;;  %v2497_v46 = vadd.f32 %v2429_v54, %v5357_v33  ;;  %v5585_v20 = vld [vmem:[%s4545_s26 + $0xcc] sm:$0xf] }
 0x234   : > { %v3225_v44 = vpop.f32.mrf.mxu0 }
 0x235   : > { %v3292_v47 = vadd.f32 %v3222_v11, %v3030_v40  ;;  %2468 = vmatmul.bf16.gmra.mxu1 %v5363_v51  ;;  %2724 = vmatmul.bf16.gmra.mxu2 %v5375_v8 }
 0x236   : > { %3002 = vmatmul.bf16.gmra.mxu3 %v5366_v23  ;;  %v5798_v23 = vld [vmem:[#allocation39_spill] sm:$0xff] }
 0x237   : > { %3264 = vmatmul.bf16.gmra.mxu0 %v5405_v15  ;;  %v3387_v52 = vadd.f32 %v3386_v50, %v3292_v47  ;;  %v3425_v26 = vmul.f32 %v3292_v47, %v3292_v47  ;;  %3499 = vst [vmem:[%s5542_s11 + $0x38] sm:$0xff] %v3292_v47  ;;  %v2294_v50 = vrot.slane %v5385_v45, 5  ;;  %v5591_v47 = vld [vmem:[%s4545_s26 + $0xd0] sm:$0xf] }
 0x238   : > { %v2685_v57 = vpop.f32.mrf.mxu2 }
 0x239   : > { %v3456_v4 = vadd.f32 %v3455_v55, %v3425_v26  ;;  %v2753_v38 = vadd.f32 %v2685_v57, %v2497_v46  ;;  %v2963_v56 = vpop.f32.mrf.mxu3  ;;  %v3969_v55 = vrot.slane %v5799_v12, 9  ;;  %v2296_v10 = vrot.slane %v2294_v50, 4 }
 0x23a   : > { %v2431_v32 = vpop.f32.mrf.mxu1  ;;  %v2810_v26 = vshrl.u32 %v5585_v20, 16  ;;  %v2813_v46 = vshll.u32 %v5585_v20, 16 }
 0x23b   : > { %v3031_v60 = vadd.f32 %v2963_v56, %v2753_v38  ;;  %v2498_v30 = vadd.f32 %v2431_v32, %v5798_v23  ;;  %v2823_v38 = vshrl.u32 %v5591_v47, 16 }
 0x23c   : > { %v3227_v63 = vpop.f32.mrf.mxu0 }
 0x23d   : > { %v3293_v51 = vadd.f32 %v3225_v44, %v3031_v60  ;;  %v2297_v44 = vrot.slane %v5403_v42, 5  ;;  %v2295_v42 = vsel %vm4728_vm5, %v3969_v55, %v2294_v50 }
 0x23f   : > { %v3388_v35 = vadd.f32 %v3387_v52, %v3293_v51  ;;  %v3426_v8 = vmul.f32 %v3293_v51, %v3293_v51  ;;  %3500 = vst [vmem:[%s5542_s11 + $0x40] sm:$0xff] %v3293_v51  ;;  %v2298_v32 = vsel %vm4728_vm5, %v2296_v10, %v2297_v44  ;;  %v2815_v51 = vrot.slane %v2813_v46, 5 }
 0x240   : > { %v2687_v36 = vpop.f32.mrf.mxu2 }
 0x241   : > { %v3457_v48 = vadd.f32 %v3456_v4, %v3426_v8  ;;  %v2754_v11 = vadd.f32 %v2687_v36, %v2498_v30  ;;  %v2965_v17 = vpop.f32.mrf.mxu3  ;;  %v2819_v4 = vshll.u32 %v5591_v47, 16  ;;  %v2349_v8 = vunpack.c.l.b16 %v2298_v32 }
 0x242   : > { %v2434_v33 = vpop.f32.mrf.mxu1  ;;  %v2825_v30 = vrot.slane %v2823_v38, 4 }
 0x243   : > { %v3032_v0 = vadd.f32 %v2965_v17, %v2754_v11  ;;  %v2499_v45 = vadd.f32 %v2434_v33, %v5399_v16  ;;  %v2821_v23 = vrot.slane %v2819_v4, 5  ;;  %v233_v17 = vld [vmem:[%s4545_s26 + $0xd4] sm:$0x1] }
 0x244   : > { %v3230_v34 = vpop.f32.mrf.mxu0  ;;  %v3093_v4 = vrot.slane %v233_v17, 5 }
 0x245   : > { %v3294_v3 = vadd.f32 %v3227_v63, %v3032_v0  ;;  %2473 = vmatmul.bf16.gmra.mxu1 %v5405_v15  ;;  %2729 = vmatmul.bf16.gmra.mxu2 %v5416_v19  ;;  %v2812_v63 = vrot.slane %v2810_v26, 4 }
 0x246   : > { %3007 = vmatmul.bf16.gmra.mxu3 %v5407_v6 }
 0x247   : > { %3269 = vmatmul.bf16.gmra.mxu0 %v5434_v9  ;;  %v3389_v54 = vadd.f32 %v3388_v35, %v3294_v3  ;;  %v3427_v40 = vmul.f32 %v3294_v3, %v3294_v3  ;;  %3501 = vst [vmem:[%s5542_s11 + $0x48] sm:$0xff] %v3294_v3  ;;  %v2348_v35 = vunpack.c.l.b16 %v2295_v42  ;;  %v2816_v12 = vor.u32 %v2815_v51, %v2812_v63 }
 0x248   : > { %v2690_v15 = vpop.f32.mrf.mxu2 }
 0x249   : > { %v3458_v19 = vadd.f32 %v3457_v48, %v3427_v40  ;;  %v2755_v52 = vadd.f32 %v2690_v15, %v2499_v45  ;;  %v2968_v6 = vpop.f32.mrf.mxu3  ;;  %v2350_v10 = vpack.c.b16 %v2349_v8, %v2348_v35  ;;  %v2829_v40 = vshll.u32 %v233_v17, 16 }
 0x24a   : > { %v2436_v57 = vpop.f32.mrf.mxu1  ;;  %v3090_v45 = vrot.slane %v5591_v47, 5 }
 0x24b   : > { %v3033_v16 = vadd.f32 %v2968_v6, %v2755_v52  ;;  %v2500_v11 = vadd.f32 %v2436_v57, %v5413_v59  ;;  %v2817_v59 = vrot.slane %v2816_v12, 4  ;;  %v2831_v52 = vrot.slane %v2829_v40, 5 }
 0x24c   : > { %v3232_v56 = vpop.f32.mrf.mxu0  ;;  %v4118_v6 = vrot.slane %v5585_v20, 9  ;;  %v3092_v26 = vrot.slane %v3090_v45, 4 }
 0x24d   : > { %v3295_v60 = vadd.f32 %v3230_v34, %v3033_v16  ;;  %v2826_v34 = vor.u32 %v2825_v30, %v2821_v23 }
 0x24f   : > { %v3390_v36 = vadd.f32 %v3389_v54, %v3295_v60  ;;  %v3428_v48 = vmul.f32 %v3295_v60, %v3295_v60  ;;  %3502 = vst [vmem:[%s5542_s11 + $0x50] sm:$0xff] %v3295_v60  ;;  %v3091_v60 = vsel %vm4728_vm5, %v4118_v6, %v3090_v45 }
 0x250   : > { %v2692_v33 = vpop.f32.mrf.mxu2  ;;  %v3144_v8 = vunpack.c.l.b16 %v3091_v60 }
 0x251   : > { %v3459_v0 = vadd.f32 %v3458_v19, %v3428_v48  ;;  %v2756_v3 = vadd.f32 %v2692_v33, %v2500_v11  ;;  %v2970_v50 = vpop.f32.mrf.mxu3  ;;  %v2827_v19 = vrot.slane %v2826_v34, 4 }
 0x252   : > { %v2439_v55 = vpop.f32.mrf.mxu1 }
 0x253   : > { %v3034_v44 = vadd.f32 %v2970_v50, %v2756_v3  ;;  %v2501_v47 = vadd.f32 %v2439_v55, %v5431_v18  ;;  %v2832_v20 = vsel %vm4723_vm4, %v2827_v19, %v2831_v52  ;;  %v3094_v18 = vsel %vm4728_vm5, %v3092_v26, %v3093_v4 }
 0x254   : > { %v3235_v15 = vpop.f32.mrf.mxu0  ;;  %v2883_v35 = vunpack.c.l.b16 %v2832_v20  ;;  %v3145_v30 = vunpack.c.l.b16 %v3094_v18 }
 0x255   : > { %v3296_v54 = vadd.f32 %v3232_v56, %v3034_v44  ;;  %2478 = vmatmul.bf16.gmra.mxu1 %v5434_v9  ;;  %2734 = vmatmul.bf16.gmra.mxu2 %v5437_v31 }
 0x256   : > { %3012 = vmatmul.bf16.gmra.mxu3 %v5439_v58  ;;  %v2822_v58 = vsel %vm4723_vm4, %v2817_v59, %v2821_v23  ;;  %v3146_v37 = vpack.c.b16 %v3145_v30, %v3144_v8 }
 0x257   : > { %3274 = vmatmul.bf16.gmra.mxu0 %v2350_v10  ;;  %v3391_v46 = vadd.f32 %v3390_v36, %v3296_v54  ;;  %v3429_v57 = vmul.f32 %v3296_v54, %v3296_v54  ;;  %3503 = vst [vmem:[%s5542_s11 + $0x58] sm:$0xff] %v3296_v54  ;;  %v2882_v51 = vunpack.c.l.b16 %v2822_v58 }
 0x258   : > { %v2695_v38 = vpop.f32.mrf.mxu2 }
 0x259   : > { %v3460_v16 = vadd.f32 %v3459_v0, %v3429_v57  ;;  %v2757_v9 = vadd.f32 %v2695_v38, %v2501_v47  ;;  %v2973_v31 = vpop.f32.mrf.mxu3  ;;  %v4191_v0 = vld [vmem:[%s4545_s26 + $0xcc] sm:$0xff]  ;;  %v2884_v50 = vpack.c.b16 %v2883_v35, %v2882_v51  ;;  %s4264_s26 = sshll.u32 %s4489_s16, 8 }
 0x25a   : > { %v2441_v56 = vpop.f32.mrf.mxu1  ;;  %s3541_s20 = scalar_lea.hbm %s5710_s2, %s4264_s26 }
 0x25b   : > { %v3035_v42 = vadd.f32 %v2973_v31, %v2757_v9  ;;  %v2502_v23 = vadd.f32 %v2441_v56, %v5443_v27  ;;  %s3544_s25 = sshll.u32 %s3541_s20, 4  ;;  %s3545_s25 = int_to_ptr.hbm [resolvable:$true] %s3544_s25 }
 0x25c   : > { %v3237_v32 = vpop.f32.mrf.mxu0  ;;  %s4364_s28 = sshra.s32 %s3545_s25, 4  ;;  %s4365_s28 = int_to_ptr.hbm [resolvable:$true] %s4364_s28 }
 0x25d   : > { %v3297_v63 = vadd.f32 %v3235_v15, %v3035_v42  ;;  %s4366_s29 = scalar_lea.hbm %s4365_s28, 256  ;;  %p4371_p0 = scmp.lt.s32.totalorder %s4365_s28, %s5710_s2 }
 0x25e   : > { %p4367_p11 = scmp.ne.s32.totalorder %s4365_s28, %s4366_s29  ;;  %p4372_p1 = scmp.lt.s32.totalorder %s4370_s5, %s4366_s29 }
 0x25f   : > { %v3392_v36 = vadd.f32 %v3391_v46, %v3297_v63  ;;  %v3430_v48 = vmul.f32 %v3297_v63, %v3297_v63  ;;  %3504 = vst [vmem:[%s5542_s11 + $0x60] sm:$0xff] %v3297_v63 }
 0x260   : > { %v2697_v11 = vpop.f32.mrf.mxu2  ;;  %p4368_p12 = pnand %p4367_p11, %p4506_p5  ;;  %p4373_p2 = por %p4372_p1, %p4371_p0 }
 0x261   : > { %v3461_v29 = vadd.f32 %v3460_v16, %v3430_v48  ;;  %v2758_v17 = vadd.f32 %v2697_v11, %v2502_v23  ;;  %v2975_v33 = vpop.f32.mrf.mxu3 }
 0x262   : > { %v2444_v3 = vpop.f32.mrf.mxu1  ;;  %p4369_p13 = pneg %p4368_p12 }
 0x263   : > { %v3036_v12 = vadd.f32 %v2975_v33, %v2758_v17  ;;  %v2503_v27 = vadd.f32 %v2444_v3, %v5448_v22 }
 0x264   : > { %v3240_v55 = vpop.f32.mrf.mxu0  ;;  %p4374_p3 = pnand %p4373_p2, %p4369_p13 }
 0x265   : > { %v3298_v34 = vadd.f32 %v3237_v32, %v3036_v12  ;;  %2483 = vmatmul.bf16.gmra.mxu1 %v2350_v10  ;;  %2739 = vmatmul.bf16.gmra.mxu2 %v4191_v0 }
 0x266   : > { %3017 = vmatmul.bf16.gmra.mxu3 %v2884_v50 }
 0x267   : > { %3279 = vmatmul.bf16.gmra.mxu0 %v3146_v37  ;;  %v3393_v40 = vadd.f32 %v3392_v36, %v3298_v34  ;;  %v3431_v45 = vmul.f32 %v3298_v34, %v3298_v34  ;;  %3505 = vst [vmem:[%s5542_s11 + $0x68] sm:$0xff] %v3298_v34 }
 0x268   : > { %v2700_v44 = vpop.f32.mrf.mxu2 }
 0x269   : > { %v3462_v15 = vadd.f32 %v3461_v29, %v3431_v45  ;;  %v2759_v54 = vadd.f32 %v2700_v44, %v2503_v27  ;;  %v2978_v59 = vpop.f32.mrf.mxu3 }
 0x26a   : > { %v2446_v19 = vpop.f32.mrf.mxu1 }
 0x26b   : > { %v3037_v52 = vadd.f32 %v2978_v59, %v2759_v54  ;;  %v2504_v57 = vadd.f32 %v2446_v19, %v5453_v39 }
 0x26c   : > { %v3242_v6 = vpop.f32.mrf.mxu0 }
 0x26d   : > { %v3299_v26 = vadd.f32 %v3240_v55, %v3037_v52 }
 0x26f   : > { %v3394_v46 = vadd.f32 %v3393_v40, %v3299_v26  ;;  %v3432_v10 = vmul.f32 %v3299_v26, %v3299_v26  ;;  %3506 = vst [vmem:[%s5542_s11 + $0x70] sm:$0xff] %v3299_v26 }
 0x270   : > { %v2702_v47 = vpop.f32.mrf.mxu2 }
 0x271   : > { %v3463_v4 = vadd.f32 %v3462_v15, %v3432_v10  ;;  %v2760_v38 = vadd.f32 %v2702_v47, %v2504_v57  ;;  %v2980_v16 = vpop.f32.mrf.mxu3 }
 0x272   : > { %v2449_v9 = vpop.f32.mrf.mxu1 }
 0x273   : > { %v3038_v22 = vadd.f32 %v2980_v16, %v2760_v38  ;;  %v2505_v32 = vadd.f32 %v2449_v9, %v5458_v7 }
 0x274   : > { %v3245_v31 = vpop.f32.mrf.mxu0 }
 0x275   : > { %v3300_v56 = vadd.f32 %v3242_v6, %v3038_v22 }
 0x277   : > { %v3395_v58 = vadd.f32 %v3394_v46, %v3300_v56  ;;  %v3433_v42 = vmul.f32 %v3300_v56, %v3300_v56  ;;  %3507 = vst [vmem:[%s5542_s11 + $0x78] sm:$0xff] %v3300_v56 }
 0x278   : > { %v2705_v20 = vpop.f32.mrf.mxu2 }
 0x279   : > { %v3464_v60 = vadd.f32 %v3463_v4, %v3433_v42  ;;  %v2761_v18 = vadd.f32 %v2705_v20, %v2505_v32  ;;  %v2983_v63 = vpop.f32.mrf.mxu3 }
 0x27a   : > { %v2451_v51 = vpop.f32.mrf.mxu1 }
 0x27b   : > { %v3039_v39 = vadd.f32 %v2983_v63, %v2761_v18  ;;  %v2506_v48 = vadd.f32 %v2451_v51, %v5463_v25 }
 0x27c   : > { %v3247_v35 = vpop.f32.mrf.mxu0 }
 0x27d   : > { %v3301_v8 = vadd.f32 %v3245_v31, %v3039_v39 }
 0x27f   : > { %v3396_v30 = vadd.f32 %v3395_v58, %v3301_v8  ;;  %v3434_v36 = vmul.f32 %v3301_v8, %v3301_v8  ;;  %3508 = vst [vmem:[%s5542_s11 + $0x80] sm:$0xff] %v3301_v8 }
 0x280   : > { %v2707_v23 = vpop.f32.mrf.mxu2 }
 0x281   : > { %v3465_v11 = vadd.f32 %v3464_v60, %v3434_v36  ;;  %v2762_v29 = vadd.f32 %v2707_v23, %v2506_v48  ;;  %v2985_v17 = vpop.f32.mrf.mxu3 }
 0x282   : > { %v2454_v33 = vpop.f32.mrf.mxu1 }
 0x283   : > { %v3040_v7 = vadd.f32 %v2985_v17, %v2762_v29  ;;  %v2507_v12 = vadd.f32 %v2454_v33, %v5468_v1 }
 0x284   : > { %v3250_v0 = vpop.f32.mrf.mxu0 }
 0x285   : > { %v3302_v3 = vadd.f32 %v3247_v35, %v3040_v7 }
 0x287   : > { %v3397_v50 = vadd.f32 %v3396_v30, %v3302_v3  ;;  %v3435_v37 = vmul.f32 %v3302_v3, %v3302_v3  ;;  %3509 = vst [vmem:[%s5542_s11 + $0x88] sm:$0xff] %v3302_v3 }
 0x288   : > { %v2710_v55 = vpop.f32.mrf.mxu2 }
 0x289   : > { %v3466_v34 = vadd.f32 %v3465_v11, %v3435_v37  ;;  %v2763_v40 = vadd.f32 %v2710_v55, %v2507_v12  ;;  %v2988_v45 = vpop.f32.mrf.mxu3 }
 0x28a   : > { %v2456_v27 = vpop.f32.mrf.mxu1 }
 0x28b   : > { %v3041_v25 = vadd.f32 %v2988_v45, %v2763_v40  ;;  %v2508_v19 = vadd.f32 %v2456_v27, %v5473_v5 }
 0x28c   : > { %v3252_v44 = vpop.f32.mrf.mxu0 }
 0x28d   : > { %v3303_v15 = vadd.f32 %v3250_v0, %v3041_v25 }
 0x28f   : > { %v3398_v54 = vadd.f32 %v3397_v50, %v3303_v15  ;;  %v3436_v59 = vmul.f32 %v3303_v15, %v3303_v15  ;;  %3510 = vst [vmem:[%s5542_s11 + $0x90] sm:$0xff] %v3303_v15 }
 0x290   : > { %v2712_v52 = vpop.f32.mrf.mxu2 }
 0x291   : > { %v3467_v6 = vadd.f32 %v3466_v34, %v3436_v59  ;;  %v2764_v26 = vadd.f32 %v2712_v52, %v2508_v19  ;;  %v2990_v46 = vpop.f32.mrf.mxu3 }
 0x292   : > { %v2459_v10 = vpop.f32.mrf.mxu1 }
 0x293   : > { %v3042_v1 = vadd.f32 %v2990_v46, %v2764_v26  ;;  %v2509_v16 = vadd.f32 %v2459_v10, %v5478_v14 }
 0x294   : > { %v3255_v57 = vpop.f32.mrf.mxu0 }
 0x295   : > { %v3304_v47 = vadd.f32 %v3252_v44, %v3042_v1 }
 0x297   : > { %v3399_v4 = vadd.f32 %v3398_v54, %v3304_v47  ;;  %v3437_v38 = vmul.f32 %v3304_v47, %v3304_v47  ;;  %3511 = vst [vmem:[%s5542_s11 + $0x98] sm:$0xff] %v3304_v47 }
 0x298   : > { %v2715_v9 = vpop.f32.mrf.mxu2 }
 0x299   : > { %v3468_v22 = vadd.f32 %v3467_v6, %v3437_v38  ;;  %v2765_v31 = vadd.f32 %v2715_v9, %v2509_v16  ;;  %v2993_v56 = vpop.f32.mrf.mxu3 }
 0x29a   : > { %v2461_v58 = vpop.f32.mrf.mxu1 }
 0x29b   : > { %v3043_v5 = vadd.f32 %v2993_v56, %v2765_v31  ;;  %v2510_v18 = vadd.f32 %v2461_v58, %v5483_v13 }
 0x29c   : > { %v3257_v42 = vpop.f32.mrf.mxu0 }
 0x29d   : > { %v3305_v32 = vadd.f32 %v3255_v57, %v3043_v5 }
 0x29f   : > { %v3400_v20 = vadd.f32 %v3399_v4, %v3305_v32  ;;  %v3438_v60 = vmul.f32 %v3305_v32, %v3305_v32  ;;  %3512 = vst [vmem:[%s5542_s11 + $0xa0] sm:$0xff] %v3305_v32 }
 0x2a0   : > { %v2717_v63 = vpop.f32.mrf.mxu2 }
 0x2a1   : > { %v3469_v51 = vadd.f32 %v3468_v22, %v3438_v60  ;;  %v2766_v39 = vadd.f32 %v2717_v63, %v2510_v18  ;;  %v2995_v35 = vpop.f32.mrf.mxu3 }
 0x2a2   : > { %v2464_v8 = vpop.f32.mrf.mxu1 }
 0x2a3   : > { %v3044_v14 = vadd.f32 %v2995_v35, %v2766_v39  ;;  %v2511_v11 = vadd.f32 %v2464_v8, %v5488_v53 }
 0x2a4   : > { %v3260_v30 = vpop.f32.mrf.mxu0 }
 0x2a5   : > { %v3306_v36 = vadd.f32 %v3257_v42, %v3044_v14 }
 0x2a7   : > { %v3401_v48 = vadd.f32 %v3400_v20, %v3306_v36  ;;  %v3439_v23 = vmul.f32 %v3306_v36, %v3306_v36  ;;  %3513 = vst [vmem:[%s5542_s11 + $0xa8] sm:$0xff] %v3306_v36 }
 0x2a8   : > { %v2720_v29 = vpop.f32.mrf.mxu2 }
 0x2a9   : > { %v3470_v17 = vadd.f32 %v3469_v51, %v3439_v23  ;;  %v2767_v33 = vadd.f32 %v2720_v29, %v2511_v11  ;;  %v2998_v7 = vpop.f32.mrf.mxu3 }
 0x2aa   : > { %v2466_v0 = vpop.f32.mrf.mxu1 }
 0x2ab   : > { %v3045_v13 = vadd.f32 %v2998_v7, %v2767_v33  ;;  %v2512_v55 = vadd.f32 %v2466_v0, %v5493_v61 }
 0x2ac   : > { %v3262_v3 = vpop.f32.mrf.mxu0 }
 0x2ad   : > { %v3307_v50 = vadd.f32 %v3260_v30, %v3045_v13 }
 0x2af   : > { %v3402_v37 = vadd.f32 %v3401_v48, %v3307_v50  ;;  %v3440_v12 = vmul.f32 %v3307_v50, %v3307_v50  ;;  %3514 = vst [vmem:[%s5542_s11 + $0xb0] sm:$0xff] %v3307_v50 }
 0x2b0   : > { %v2722_v34 = vpop.f32.mrf.mxu2 }
 0x2b1   : > { %v3471_v40 = vadd.f32 %v3470_v17, %v3440_v12  ;;  %v2768_v45 = vadd.f32 %v2722_v34, %v2512_v55  ;;  %v3000_v27 = vpop.f32.mrf.mxu3 }
 0x2b2   : > { %v2469_v25 = vpop.f32.mrf.mxu1 }
 0x2b3   : > { %v3046_v53 = vadd.f32 %v3000_v27, %v2768_v45  ;;  %v2513_v19 = vadd.f32 %v2469_v25, %v5498_v2 }
 0x2b4   : > { %v3265_v44 = vpop.f32.mrf.mxu0 }
 0x2b5   : > { %v3308_v15 = vadd.f32 %v3262_v3, %v3046_v53 }
 0x2b7   : > { %v3403_v54 = vadd.f32 %v3402_v37, %v3308_v15  ;;  %v3441_v59 = vmul.f32 %v3308_v15, %v3308_v15  ;;  %3515 = vst [vmem:[%s5542_s11 + $0xb8] sm:$0xff] %v3308_v15 }
 0x2b8   : > { %v2725_v52 = vpop.f32.mrf.mxu2 }
 0x2b9   : > { %v3472_v6 = vadd.f32 %v3471_v40, %v3441_v59  ;;  %v2769_v26 = vadd.f32 %v2725_v52, %v2513_v19  ;;  %v3003_v46 = vpop.f32.mrf.mxu3 }
 0x2ba   : > { %v2471_v10 = vpop.f32.mrf.mxu1 }
 0x2bb   : > { %v3047_v61 = vadd.f32 %v3003_v46, %v2769_v26  ;;  %v2514_v38 = vadd.f32 %v2471_v10, %v5503_v21 }
 0x2bc   : > { %v3267_v1 = vpop.f32.mrf.mxu0 }
 0x2bd   : > { %v3309_v57 = vadd.f32 %v3265_v44, %v3047_v61 }
 0x2bf   : > { %v3404_v47 = vadd.f32 %v3403_v54, %v3309_v57  ;;  %v3442_v4 = vmul.f32 %v3309_v57, %v3309_v57  ;;  %3516 = vst [vmem:[%s5542_s11 + $0xc0] sm:$0xff] %v3309_v57 }
 0x2c0   : > { %v2727_v16 = vpop.f32.mrf.mxu2 }
 0x2c1   : > { %v3473_v9 = vadd.f32 %v3472_v6, %v3442_v4  ;;  %v2770_v22 = vadd.f32 %v2727_v16, %v2514_v38  ;;  %v3005_v31 = vpop.f32.mrf.mxu3 }
 0x2c2   : > { %v2474_v56 = vpop.f32.mrf.mxu1 }
 0x2c3   : > { %v3048_v2 = vadd.f32 %v3005_v31, %v2770_v22  ;;  %v2515_v20 = vadd.f32 %v2474_v56, %v5508_v28 }
 0x2c4   : > { %v3270_v58 = vpop.f32.mrf.mxu0 }
 0x2c5   : > { %v3310_v5 = vadd.f32 %v3267_v1, %v3048_v2 }
 0x2c7   : > { %v3405_v42 = vadd.f32 %v3404_v47, %v3310_v5  ;;  %v3443_v32 = vmul.f32 %v3310_v5, %v3310_v5  ;;  %3517 = vst [vmem:[%s5542_s11 + $0xc8] sm:$0xff] %v3310_v5 }
 0x2c8   : > { %v2730_v60 = vpop.f32.mrf.mxu2 }
 0x2c9   : > { %v3474_v18 = vadd.f32 %v3473_v9, %v3443_v32  ;;  %v2771_v63 = vadd.f32 %v2730_v60, %v2515_v20  ;;  %v3008_v51 = vpop.f32.mrf.mxu3 }
 0x2ca   : > { %v2476_v39 = vpop.f32.mrf.mxu1 }
 0x2cb   : > { %v3049_v21 = vadd.f32 %v3008_v51, %v2771_v63  ;;  %v2516_v36 = vadd.f32 %v2476_v39, %v5513_v43 }
 0x2cc   : > { %v3272_v35 = vpop.f32.mrf.mxu0 }
 0x2cd   : > { %v3311_v8 = vadd.f32 %v3270_v58, %v3049_v21 }
 0x2cf   : > { %v3406_v14 = vadd.f32 %v3405_v42, %v3311_v8  ;;  %v3444_v30 = vmul.f32 %v3311_v8, %v3311_v8  ;;  %3518 = vst [vmem:[%s5542_s11 + $0xd0] sm:$0xff] %v3311_v8 }
 0x2d0   : > { %v2732_v48 = vpop.f32.mrf.mxu2 }
 0x2d1   : > { %v3475_v23 = vadd.f32 %v3474_v18, %v3444_v30  ;;  %v2772_v11 = vadd.f32 %v2732_v48, %v2516_v36  ;;  %v3010_v29 = vpop.f32.mrf.mxu3 }
 0x2d2   : > { %v2479_v17 = vpop.f32.mrf.mxu1 }
 0x2d3   : > { %v3050_v28 = vadd.f32 %v3010_v29, %v2772_v11  ;;  %v2517_v3 = vadd.f32 %v2479_v17, %v5518_v49 }
 0x2d4   : > { %v3275_v7 = vpop.f32.mrf.mxu0 }
 0x2d5   : > { %v3312_v33 = vadd.f32 %v3272_v35, %v3050_v28 }
 0x2d7   : > { %v3407_v0 = vadd.f32 %v3406_v14, %v3312_v33  ;;  %v3445_v13 = vmul.f32 %v3312_v33, %v3312_v33  ;;  %3519 = vst [vmem:[%s5542_s11 + $0xd8] sm:$0xff] %v3312_v33 }
 0x2d8   : > { %v2735_v50 = vpop.f32.mrf.mxu2 }
 0x2d9   : > { %v3476_v37 = vadd.f32 %v3475_v23, %v3445_v13  ;;  %v2773_v12 = vadd.f32 %v2735_v50, %v2517_v3  ;;  %v3013_v55 = vpop.f32.mrf.mxu3 }
 0x2da   : > { %v2481_v34 = vpop.f32.mrf.mxu1 }
 0x2db   : > { %v3051_v43 = vadd.f32 %v3013_v55, %v2773_v12  ;;  %v2518_v25 = vadd.f32 %v2481_v34, %v5523_v24 }
 0x2dc   : > { %v3277_v53 = vpop.f32.mrf.mxu0 }
 0x2dd   : > { %v3313_v40 = vadd.f32 %v3275_v7, %v3051_v43 }
 0x2df   : > { %v3408_v45 = vadd.f32 %v3407_v0, %v3313_v40  ;;  %v3446_v27 = vmul.f32 %v3313_v40, %v3313_v40  ;;  %3520 = vst [vmem:[%s5542_s11 + $0xe0] sm:$0xff] %v3313_v40 }
 0x2e0   : > { %v2737_v44 = vpop.f32.mrf.mxu2 }
 0x2e1   : > { %v3477_v15 = vadd.f32 %v3476_v37, %v3446_v27  ;;  %v2774_v54 = vadd.f32 %v2737_v44, %v2518_v25  ;;  %v3015_v59 = vpop.f32.mrf.mxu3 }
 0x2e2   : > { %v2484_v49 = vpop.f32.mrf.mxu1 }
 0x2e3   : > { %v3052_v19 = vadd.f32 %v3015_v59, %v2774_v54  ;;  %v2519_v46 = vadd.f32 %v2484_v49, %v5528_v41 }
 0x2e4   : > { %v3280_v57 = vpop.f32.mrf.mxu0 }
 0x2e5   : > { %v3314_v52 = vadd.f32 %v3277_v53, %v3052_v19 }
 0x2e7   : > { %v3409_v6 = vadd.f32 %v3408_v45, %v3314_v52  ;;  %v3447_v26 = vmul.f32 %v3314_v52, %v3314_v52  ;;  %3521 = vst [vmem:[%s5542_s11 + $0xe8] sm:$0xff] %v3314_v52 }
 0x2e8   : > { %v2740_v10 = vpop.f32.mrf.mxu2 }
 0x2e9   : > { %v3478_v61 = vadd.f32 %v3477_v15, %v3447_v26  ;;  %v2775_v1 = vadd.f32 %v2740_v10, %v2519_v46  ;;  %v3018_v24 = vpop.f32.mrf.mxu3 }
 0x2ea   : > { %v2486_v4 = vpop.f32.mrf.mxu1 }
 0x2eb   : > { %v3053_v47 = vadd.f32 %v3018_v24, %v2775_v1  ;;  %v2520_v41 = vadd.f32 %v2486_v4, %v5533_v62 }
 0x2ec   : > { %v3282_v5 = vpop.f32.mrf.mxu0 }
 0x2ed   : > { %v3315_v38 = vadd.f32 %v3280_v57, %v3053_v47 }
 0x2ef   : > { %v3410_v16 = vadd.f32 %v3409_v6, %v3315_v38  ;;  %v3448_v9 = vmul.f32 %v3315_v38, %v3315_v38  ;;  %3522 = vst [vmem:[%s5542_s11 + $0xf0] sm:$0xff] %v3315_v38 }
 0x2f0   : > { %v2742_v22 = vpop.f32.mrf.mxu2 }
 0x2f1   : > { %v3479_v31 = vadd.f32 %v3478_v61, %v3448_v9  ;;  %v2776_v56 = vadd.f32 %v2742_v22, %v2520_v41  ;;  %v3020_v2 = vpop.f32.mrf.mxu3 }
 0x2f3   : > { %v3054_v58 = vadd.f32 %v3020_v2, %v2776_v56 }
 0x2f5   : > { %v3316_v42 = vadd.f32 %v3282_v5, %v3054_v58 }
 0x2f7   : > { %v3411_v32 = vadd.f32 %v3410_v16, %v3316_v42  ;;  %v3449_v20 = vmul.f32 %v3316_v42, %v3316_v42  ;;  %3523 = vst [vmem:[%s5542_s11 + $0xf8] sm:$0xff] %v3316_v42 }
 0x2f8   : > { %4377 = shalt.err (!%p4374_p3)
}
 0x2f9   : > { %s4446_s8 = smov 128   ;;  %s4447_s10 = smov 8   ;;  %v3412_v62 = vrot.slane %v3411_v32, 4  ;;  %v3480_v60 = vadd.f32 %v3479_v31, %v3449_v20  ;;  %vm3487_vm6 = vcmask 1040384   ;;  %vm3489_vm7 = vcmask 1041408  }
 0x2fa   : > { %4290 = dma.vmem_to_hbm [thread:$0]  (%p4506_p5), %s3543_s24, 4096, %s3545_s25, %s3525_s27, %s4446_s8, %s4446_s8, %s4447_s10  }
 0x2fb   : > { %v3413_v18 = vadd.f32 %v3412_v62, %v3411_v32  ;;  %v3481_v63 = vrot.slane %v3480_v60, 4  ;;  %s3659_s11 = sshll.u32 %s5538_s9, 3  ;;  %s4171_s26 = sshll.u32 %s4489_s16, 3 }
 0x2fc   : > { %s3557_s20 = scalar_lea.hbm %s5711_s3, %s4171_s26  ;;  %s174_s24 = scalar_lea.vmem [#allocation5], %s3659_s11 }
 0x2fd   : > { %v3414_v51 = vrot.slane %v3413_v18, 2  ;;  %v3482_v39 = vadd.f32 %v3481_v63, %v3480_v60  ;;  %s3559_s25 = sshll.u32 %s174_s24, 4  ;;  %s3561_s27 = sshll.u32 %s3557_s20, 4  ;;  %s3560_s25 = int_to_ptr.vmem [resolvable:$true] %s3559_s25  ;;  %s3562_s27 = int_to_ptr.hbm [resolvable:$true] %s3561_s27 }
 0x2fe   : > { %s3530_s16 = scalar_lea.sflag [#allocation6], %s5538_s9  ;;  %s4392_s28 = sshra.s32 %s3562_s27, 4  ;;  %s4393_s28 = int_to_ptr.hbm [resolvable:$true] %s4392_s28 }
 0x2ff   : > { %v3415_v21 = vadd.f32 %v3414_v51, %v3413_v18  ;;  %v3483_v35 = vrot.slane %v3482_v39, 2  ;;  %s4394_s29 = scalar_lea.hbm %s4393_s28, 8  ;;  %s4398_s5 = scalar_lea.hbm %s5711_s3, 16 }
 0x300   : > { %p4395_p4 = scmp.ne.s32.totalorder %s4393_s28, %s4394_s29  ;;  %p4399_p9 = scmp.lt.s32.totalorder %s4393_s28, %s5711_s3 }
 0x301   : > { %v3416_v8 = vrot.slane %v3415_v21, 1  ;;  %v3484_v14 = vadd.f32 %v3483_v35, %v3482_v39  ;;  %p4400_p10 = scmp.lt.s32.totalorder %s4398_s5, %s4394_s29 }
 0x302   : > { %p4396_p7 = pnand %p4395_p4, %p4506_p5 }
 0x303   : > { %v3485_v30 = vrot.slane %v3484_v14, 1  ;;  %v3417_v36 = vadd.f32 %v3416_v8, %v3415_v21  ;;  %p4401_p11 = por %p4400_p10, %p4399_p9 }
 0x304   : > { %p4397_p8 = pneg %p4396_p7 }
 0x305   : > { %v3486_v48 = vadd.f32 %v3485_v30, %v3484_v14 }
 0x306   : > { %p4402_p12 = pnand %p4401_p11, %p4397_p8 }
 0x307   : > { %v3488_v23 = vsel %vm3487_vm6, %v3417_v36, %v3486_v48 }
 0x308   : > { %v3490_v11 = vsel %vm3489_vm7, %v3488_v23, 0.0 }
 0x309   : > { %3491 = vst [vmem:[%s174_s24] sm:$0xff] %v3490_v11 }
 0x30a   : > { %4405 = shalt.err (!%p4402_p12)
}
 0x30b   : > { %4291 = dma.vmem_to_hbm [thread:$0]  (%p4506_p5), %s3560_s25, 128, %s3562_s27, %s3530_s16  }
 0x30c PF: > { %p4301_p13 = scmp.ge.s32.totalorder %s4444_s15, 2  ;;  %s3573_s9 = sand.u32 1, %s4432_s12  }
 0x30d   : > { %s3574_s8 = scalar_lea.sflag [#allocation4], %s3573_s9 }
 0x30e   : > { %p4295_p0 = pnand %p4301_p13, %p4510_p6 }
 0x310   : > { %p4296_p1 = pneg %p4295_p0 }
 0x312   : > { %4423 = dma.done.wait (%p4296_p1), %s3574_s8, 4096  }
 0x313   : > { %4425 = vsyncadd (%p4296_p1), %s3574_s8, 4294963200  ;;  %s3584_s10 = scalar_lea.sflag [#allocation6], %s3573_s9 }
 0x314   : > { %4427 = dma.done.wait (%p4296_p1), %s3584_s10, 128  }
 0x315   : > { %4429 = vsyncadd (%p4296_p1), %s3584_s10, 4294967168  ;;  %p17_p5 = scmp.ge.s32.totalorder %s4493_s18, 4   ;;  %s5800_s12 = smov %s4436_s13 }
 0x316   : > { %s5801_s13 = smov %s4440_s14  ;;  %s5802_s14 = smov %s4504_s21 }
 0x317   : > { %s5803_s15 = smov %s4493_s18  ;;  %19 = sbr.rel (!%p17_p5) target bundleno = 5 (0x5), region = 88 }
 0x31c   :  { %3590 = vsyncpa [#allocation4], 1 }
 0x31d   :  { %3592 = vsyncpa [#allocation4 + $0x1], 1 }
 0x31e   :  { %3593 = vsyncpa [#allocation6], 1 }
 0x31f   :  { %3595 = vsyncpa [#allocation6 + $0x1], 1 }

</bundles_post_ra>
